<compile_context>
chip_gen: v7x
topology: tpu7x:2x2x1
jax: 0.10.0
libtpu: 0.0.40
codegen_flags: <defaults>
</compile_context>

<pallas_src>
import functools

import jax
import jax.numpy as jnp
from jax import lax
from jax.experimental import pallas as pl
from jax.experimental.pallas import tpu as pltpu


# ---------------------------------------------------------------------------
# Fused kernel: (guiding*keys) -> cross-attention -> MLP tokens -> mask heads
# ---------------------------------------------------------------------------
def _fused_kernel(g_chw_ref, keys_ref, q_ref, qpe_ref, kpe_ref,
                  wq_ref, bq_ref, wk_ref, bk_ref, wv_ref, bv_ref,
                  wo_ref, bo_ref,
                  su_ref, sr_ref,
                  uw1_ref, ub1_ref, uw2_ref, ub2_ref, uw3_ref, ub3_ref,
                  rw1_ref, rb1_ref, rw2_ref, rb2_ref, rw3_ref, rb3_ref,
                  queries_ref, guiding_ref, masks_ref,
                  *, num_heads):
    # ---- guiding = flatten(guiding).permute(0,2,1) * keys  (transpose in VMEM)
    g = g_chw_ref[...].T * keys_ref[...]                      # (HW, C)
    guiding_ref[...] = g

    # ---- cross attention (tokens -> image) --------------------------------
    q_in = q_ref[...] + qpe_ref[...]                          # (NQ, C)
    k_in = g + kpe_ref[...]                                   # (HW, C)
    v_in = g

    q = jnp.dot(q_in, wq_ref[...], preferred_element_type=jnp.float32) + bq_ref[...]
    k = jnp.dot(k_in, wk_ref[...], preferred_element_type=jnp.float32) + bk_ref[...]
    v = jnp.dot(v_in, wv_ref[...], preferred_element_type=jnp.float32) + bv_ref[...]

    d_int = q.shape[-1]
    hd = d_int // num_heads
    scale = 1.0 / (hd ** 0.5)

    # Per-head attention; the output projection is accumulated per head, so no
    # lane-narrow concatenate / relayout is needed.
    attn_out = None
    for h in range(num_heads):                                # static head loop
        sl = slice(h * hd, (h + 1) * hd)
        qh = q[:, sl]                                         # (NQ, hd)
        kh = k[:, sl]                                         # (HW, hd)
        vh = v[:, sl]                                         # (HW, hd)
        s = lax.dot_general(qh, kh, (((1,), (1,)), ((), ())),
                            preferred_element_type=jnp.float32) * scale  # (NQ, HW)
        m = jnp.max(s, axis=-1, keepdims=True)
        e = jnp.exp(s - m)
        p = e * pl.reciprocal(jnp.sum(e, axis=-1, keepdims=True), approx=True)
        oh = jnp.dot(p, vh, preferred_element_type=jnp.float32)           # (NQ, hd)
        part = jnp.dot(oh, wo_ref[sl, :], preferred_element_type=jnp.float32)
        attn_out = part if attn_out is None else attn_out + part
    attn_out = attn_out + bo_ref[...]                         # (NQ, C)

    # ---- coarse query token (index 4 of the attention output) -------------
    coarse_q = attn_out[4:5, :]                               # (1, C)
    c = coarse_q.shape[-1]

    # ---- uncertain / refined 3-layer MLPs (Linear-ReLU-Linear-ReLU-Linear) -
    def mlp3(static_tok, w1, b1, w2, b2, w3, b3):
        # First layer acts on concat([static_tok, coarse_q], -1); split W1 by
        # rows instead of materializing the lane concat.
        h1 = (jnp.dot(static_tok, w1[:c, :], preferred_element_type=jnp.float32)
              + jnp.dot(coarse_q, w1[c:, :], preferred_element_type=jnp.float32)
              + b1[...])
        h1 = jnp.maximum(h1, 0.0)
        h2 = jnp.maximum(
            jnp.dot(h1, w2[...], preferred_element_type=jnp.float32) + b2[...], 0.0)
        return jnp.dot(h2, w3[...], preferred_element_type=jnp.float32) + b3[...]

    uncertain_tok = mlp3(su_ref[...], uw1_ref, ub1_ref, uw2_ref, ub2_ref,
                         uw3_ref, ub3_ref)                    # (1, C)
    refined_tok = mlp3(sr_ref[...], rw1_ref, rb1_ref, rw2_ref, rb2_ref,
                       rw3_ref, rb3_ref)                      # (1, C)

    # ---- mask heads: one (3,C) x (HW,C)^T matmul, contraction on C ---------
    toks = jnp.concatenate([uncertain_tok, refined_tok, coarse_q], axis=0)  # (3, C)
    logits = lax.dot_general(toks, g, (((1,), (1,)), ((), ())),
                             preferred_element_type=jnp.float32)            # (3, HW)
    unc_norm = jax.nn.sigmoid(logits[0:1, :])
    refined_mask = logits[1:2, :]
    coarse_mask = logits[2:3, :]
    final_mask = jnp.where(unc_norm >= 0.5, refined_mask, coarse_mask)
    masks_ref[...] = jnp.concatenate(
        [unc_norm, refined_mask, coarse_mask, final_mask], axis=0)          # (4, HW)

    # ---- output queries: attention output with token 4 replaced -----------
    row_ids = lax.broadcasted_iota(jnp.int32, attn_out.shape, 0)
    queries_ref[...] = jnp.where(row_ids == 4, refined_tok, attn_out)


def fused_prompt_adapter(g_chw, keys, queries, query_pe, key_pe, params, num_heads):
    b, hw, c = keys.shape
    nq = queries.shape[1]
    a = params["attn"]
    um = params["uncertain_mlp"]
    rm = params["refined_mlp"]
    d_int = a["wq"].shape[1]
    hid = um["w1"].shape[1]

    seq = lambda s: pl.BlockSpec((None,) + s, lambda i: (i, 0, 0))
    rep = lambda s: pl.BlockSpec(s, lambda i: (0,) * len(s))

    out_shape = (
        jax.ShapeDtypeStruct((b, nq, c), jnp.float32),    # new queries
        jax.ShapeDtypeStruct((b, hw, c), jnp.float32),    # guiding_embedding
        jax.ShapeDtypeStruct((b, 4, hw), jnp.float32),    # [unc, refined, coarse, final]
    )
    return pl.pallas_call(
        functools.partial(_fused_kernel, num_heads=num_heads),
        grid=(b,),
        in_specs=[
            seq((c, hw)), seq((hw, c)), seq((nq, c)), seq((nq, c)), seq((hw, c)),
            rep((c, d_int)), rep((1, d_int)),
            rep((c, d_int)), rep((1, d_int)),
            rep((c, d_int)), rep((1, d_int)),
            rep((d_int, c)), rep((1, c)),
            rep((1, c)), rep((1, c)),
            rep((2 * c, hid)), rep((1, hid)), rep((hid, hid)), rep((1, hid)),
            rep((hid, c)), rep((1, c)),
            rep((2 * c, hid)), rep((1, hid)), rep((hid, hid)), rep((1, hid)),
            rep((hid, c)), rep((1, c)),
        ],
        out_specs=[
            pl.BlockSpec((None, nq, c), lambda i: (i, 0, 0)),
            pl.BlockSpec((None, hw, c), lambda i: (i, 0, 0)),
            pl.BlockSpec((None, 4, hw), lambda i: (i, 0, 0)),
        ],
        out_shape=out_shape,
        compiler_params=pltpu.CompilerParams(
            dimension_semantics=("parallel",),
            vmem_limit_bytes=64 * 1024 * 1024,
        ),
    )(g_chw, keys, queries, query_pe, key_pe,
      a["wq"], a["bq"], a["wk"], a["bk"], a["wv"], a["bv"], a["wo"], a["bo"],
      params["static_uncertain"], params["static_refined"],
      um["w1"], um["b1"], um["w2"], um["b2"], um["w3"], um["b3"],
      rm["w1"], rm["b1"], rm["w2"], rm["b2"], rm["w3"], rm["b3"])


# ---------------------------------------------------------------------------
# PromptAdapater forward (training path: CURRENT_EPOCH <= 4, self.training)
# ---------------------------------------------------------------------------
def prompt_adapter_forward(params, queries, keys, query_pe, key_pe,
                           guiding_embedding, num_heads):
    b, c, h, w = guiding_embedding.shape
    hw = h * w
    # NCHW -> (B, C, HW); the (HW, C) transpose happens inside the kernel.
    g_chw = guiding_embedding.reshape(b, c, hw)

    new_queries, guiding, masks = fused_prompt_adapter(
        g_chw, keys, queries, query_pe, key_pe, params, num_heads)

    mask = {
        "unceratinty_map": masks[:, 0:1, :].reshape(b, 1, h, w),
        "refined_mask": masks[:, 1:2, :].reshape(b, 1, h, w),
        "coarse_mask": masks[:, 2:3, :].reshape(b, 1, h, w),
        "final_mask": masks[:, 3:4, :].reshape(b, 1, h, w),
    }

    # TODO(synk): the CURRENT_EPOCH>4 / eval-mode point-sampling branch
    # (Gumbel top-k, F.interpolate bilinear, boolean-mask gather through
    # prompt_encoder) is not implemented; default training path skips it.
    return new_queries, guiding, query_pe, mask, None, None


# ---------------------------------------------------------------------------
# Deterministic parameter init (shapes from PromptAdapater.__init__)
# ---------------------------------------------------------------------------
def init_params(key, embedding_dim, attention_downsample_rate):
    c = embedding_dim
    d_int = c // attention_downsample_rate
    hid = c // 4
    ks = jax.random.split(key, 24)
    it = iter(ks)
    nrm = lambda k, shape: (0.02 * jax.random.normal(k, shape)).astype(jnp.float32)

    def mlp_params(dims):
        return {
            "w1": nrm(next(it), (dims[0], dims[1])), "b1": nrm(next(it), (1, dims[1])),
            "w2": nrm(next(it), (dims[1], dims[2])), "b2": nrm(next(it), (1, dims[2])),
            "w3": nrm(next(it), (dims[2], dims[3])), "b3": nrm(next(it), (1, dims[3])),
        }

    return {
        "static_uncertain": nrm(next(it), (1, c)),
        "static_refined": nrm(next(it), (1, c)),
        "uncertain_mlp": mlp_params((2 * c, hid, hid, c)),
        "refined_mlp": mlp_params((2 * c, hid, hid, c)),
        "attn": {
            "wq": nrm(next(it), (c, d_int)), "bq": nrm(next(it), (1, d_int)),
            "wk": nrm(next(it), (c, d_int)), "bk": nrm(next(it), (1, d_int)),
            "wv": nrm(next(it), (c, d_int)), "bv": nrm(next(it), (1, d_int)),
            "wo": nrm(next(it), (d_int, c)), "bo": nrm(next(it), (1, c)),
        },
    }


if __name__ == "__main__":
    EMBED = 32          # embedding_dim
    NUM_HEADS = 2
    ATTN_DS = 2         # attention_downsample_rate -> internal dim 16
    B, H, W = 2, 8, 8   # reduced spatial (reference uses 64x64)
    NQ = 8              # number of prompt tokens (needs >= 6)

    key = jax.random.PRNGKey(0)
    kp, kq, kk, kqp, kkp, kg = jax.random.split(key, 6)

    params = init_params(kp, EMBED, ATTN_DS)
    queries = jax.random.normal(kq, (B, NQ, EMBED), dtype=jnp.float32)
    keys = jax.random.normal(kk, (B, H * W, EMBED), dtype=jnp.float32)
    query_pe = jax.random.normal(kqp, (B, NQ, EMBED), dtype=jnp.float32)
    key_pe = jax.random.normal(kkp, (B, H * W, EMBED), dtype=jnp.float32)
    guiding_embedding = jax.random.normal(kg, (B, EMBED, H, W), dtype=jnp.float32)  # NCHW

    out_queries, out_guiding, out_query_pe, mask, _, _ = prompt_adapter_forward(
        params, queries, keys, query_pe, key_pe, guiding_embedding, NUM_HEADS)

    jax.block_until_ready(out_queries)
    jax.block_until_ready(out_guiding)
    jax.block_until_ready(mask["final_mask"])

    assert out_queries.shape == (B, NQ, EMBED)
    assert out_guiding.shape == (B, H * W, EMBED)
    assert mask["unceratinty_map"].shape == (B, 1, H, W)
    assert mask["final_mask"].shape == (B, 1, H, W)
    print("KERNEL_OK")
</pallas_src>

<mosaic_0001>
module attributes {stable_mosaic.version = 11 : i64} {
  func.func @_fused_kernel(%arg0: i32, %arg1: memref<1x32x64xf32, #tpu.memory_space<vmem>>, %arg2: memref<1x64x32xf32, #tpu.memory_space<vmem>>, %arg3: memref<1x8x32xf32, #tpu.memory_space<vmem>>, %arg4: memref<1x8x32xf32, #tpu.memory_space<vmem>>, %arg5: memref<1x64x32xf32, #tpu.memory_space<vmem>>, %arg6: memref<32x16xf32, #tpu.memory_space<vmem>>, %arg7: memref<1x16xf32, #tpu.memory_space<vmem>>, %arg8: memref<32x16xf32, #tpu.memory_space<vmem>>, %arg9: memref<1x16xf32, #tpu.memory_space<vmem>>, %arg10: memref<32x16xf32, #tpu.memory_space<vmem>>, %arg11: memref<1x16xf32, #tpu.memory_space<vmem>>, %arg12: memref<16x32xf32, #tpu.memory_space<vmem>>, %arg13: memref<1x32xf32, #tpu.memory_space<vmem>>, %arg14: memref<1x32xf32, #tpu.memory_space<vmem>>, %arg15: memref<1x32xf32, #tpu.memory_space<vmem>>, %arg16: memref<64x8xf32, #tpu.memory_space<vmem>>, %arg17: memref<1x8xf32, #tpu.memory_space<vmem>>, %arg18: memref<8x8xf32, #tpu.memory_space<vmem>>, %arg19: memref<1x8xf32, #tpu.memory_space<vmem>>, %arg20: memref<8x32xf32, #tpu.memory_space<vmem>>, %arg21: memref<1x32xf32, #tpu.memory_space<vmem>>, %arg22: memref<64x8xf32, #tpu.memory_space<vmem>>, %arg23: memref<1x8xf32, #tpu.memory_space<vmem>>, %arg24: memref<8x8xf32, #tpu.memory_space<vmem>>, %arg25: memref<1x8xf32, #tpu.memory_space<vmem>>, %arg26: memref<8x32xf32, #tpu.memory_space<vmem>>, %arg27: memref<1x32xf32, #tpu.memory_space<vmem>>, %arg28: memref<1x8x32xf32, #tpu.memory_space<vmem>>, %arg29: memref<1x64x32xf32, #tpu.memory_space<vmem>>, %arg30: memref<1x4x64xf32, #tpu.memory_space<vmem>>) attributes {dimension_semantics = [#tpu.dimension_semantics<parallel>], iteration_bounds = array<i64: 2>, scalar_prefetch = 0 : i64, scratch_operands = 0 : i64, tpu.core_type = #tpu.core_type<tc>, window_params = [{transform_indices = @transform_0, window_bounds = array<i64: 1, 32, 64>}, {transform_indices = @transform_1, window_bounds = array<i64: 1, 64, 32>}, {transform_indices = @transform_2, window_bounds = array<i64: 1, 8, 32>}, {transform_indices = @transform_3, window_bounds = array<i64: 1, 8, 32>}, {transform_indices = @transform_4, window_bounds = array<i64: 1, 64, 32>}, {pipeline_mode = #tpu.pipeline_mode<synchronous>, transform_indices = @transform_5, window_bounds = array<i64: 32, 16>}, {pipeline_mode = #tpu.pipeline_mode<synchronous>, transform_indices = @transform_6, window_bounds = array<i64: 1, 16>}, {pipeline_mode = #tpu.pipeline_mode<synchronous>, transform_indices = @transform_7, window_bounds = array<i64: 32, 16>}, {pipeline_mode = #tpu.pipeline_mode<synchronous>, transform_indices = @transform_8, window_bounds = array<i64: 1, 16>}, {pipeline_mode = #tpu.pipeline_mode<synchronous>, transform_indices = @transform_9, window_bounds = array<i64: 32, 16>}, {pipeline_mode = #tpu.pipeline_mode<synchronous>, transform_indices = @transform_10, window_bounds = array<i64: 1, 16>}, {pipeline_mode = #tpu.pipeline_mode<synchronous>, transform_indices = @transform_11, window_bounds = array<i64: 16, 32>}, {pipeline_mode = #tpu.pipeline_mode<synchronous>, transform_indices = @transform_12, window_bounds = array<i64: 1, 32>}, {pipeline_mode = #tpu.pipeline_mode<synchronous>, transform_indices = @transform_13, window_bounds = array<i64: 1, 32>}, {pipeline_mode = #tpu.pipeline_mode<synchronous>, transform_indices = @transform_14, window_bounds = array<i64: 1, 32>}, {pipeline_mode = #tpu.pipeline_mode<synchronous>, transform_indices = @transform_15, window_bounds = array<i64: 64, 8>}, {pipeline_mode = #tpu.pipeline_mode<synchronous>, transform_indices = @transform_16, window_bounds = array<i64: 1, 8>}, {pipeline_mode = #tpu.pipeline_mode<synchronous>, transform_indices = @transform_17, window_bounds = array<i64: 8, 8>}, {pipeline_mode = #tpu.pipeline_mode<synchronous>, transform_indices = @transform_18, window_bounds = array<i64: 1, 8>}, {pipeline_mode = #tpu.pipeline_mode<synchronous>, transform_indices = @transform_19, window_bounds = array<i64: 8, 32>}, {pipeline_mode = #tpu.pipeline_mode<synchronous>, transform_indices = @transform_20, window_bounds = array<i64: 1, 32>}, {pipeline_mode = #tpu.pipeline_mode<synchronous>, transform_indices = @transform_21, window_bounds = array<i64: 64, 8>}, {pipeline_mode = #tpu.pipeline_mode<synchronous>, transform_indices = @transform_22, window_bounds = array<i64: 1, 8>}, {pipeline_mode = #tpu.pipeline_mode<synchronous>, transform_indices = @transform_23, window_bounds = array<i64: 8, 8>}, {pipeline_mode = #tpu.pipeline_mode<synchronous>, transform_indices = @transform_24, window_bounds = array<i64: 1, 8>}, {pipeline_mode = #tpu.pipeline_mode<synchronous>, transform_indices = @transform_25, window_bounds = array<i64: 8, 32>}, {pipeline_mode = #tpu.pipeline_mode<synchronous>, transform_indices = @transform_26, window_bounds = array<i64: 1, 32>}, {transform_indices = @transform_27, window_bounds = array<i64: 1, 8, 32>}, {transform_indices = @transform_28, window_bounds = array<i64: 1, 64, 32>}, {transform_indices = @transform_29, window_bounds = array<i64: 1, 4, 64>}]} {
    %c0 = arith.constant 0 : index
    %c0_0 = arith.constant 0 : index
    %c0_1 = arith.constant 0 : index
    %0 = vector.load %arg1[%c0, %c0_0, %c0_1] : memref<1x32x64xf32, #tpu.memory_space<vmem>>, vector<1x32x64xf32>
    %1 = vector.shape_cast %0 : vector<1x32x64xf32> to vector<32x64xf32>
    %2 = tpu.transpose %1, [1, 0] : vector<32x64xf32> -> vector<64x32xf32>
    %c0_2 = arith.constant 0 : index
    %c0_3 = arith.constant 0 : index
    %c0_4 = arith.constant 0 : index
    %3 = vector.load %arg2[%c0_2, %c0_3, %c0_4] : memref<1x64x32xf32, #tpu.memory_space<vmem>>, vector<1x64x32xf32>
    %4 = vector.shape_cast %3 : vector<1x64x32xf32> to vector<64x32xf32>
    %5 = arith.mulf %2, %4 : vector<64x32xf32>
    %c0_5 = arith.constant 0 : index
    %c0_6 = arith.constant 0 : index
    %c0_7 = arith.constant 0 : index
    %6 = vector.load %arg29[%c0_5, %c0_6, %c0_7] : memref<1x64x32xf32, #tpu.memory_space<vmem>>, vector<1x64x32xf32>
    %7 = vector.shape_cast %6 : vector<1x64x32xf32> to vector<64x32xf32>
    %8 = vector.shape_cast %5 : vector<64x32xf32> to vector<1x64x32xf32>
    tpu.vector_store %arg29[%c0_5, %c0_6, %c0_7], %8 {strides = array<i32>} : memref<1x64x32xf32, #tpu.memory_space<vmem>>, vector<1x64x32xf32>,
    %c0_8 = arith.constant 0 : index
    %c0_9 = arith.constant 0 : index
    %c0_10 = arith.constant 0 : index
    %9 = vector.load %arg3[%c0_8, %c0_9, %c0_10] : memref<1x8x32xf32, #tpu.memory_space<vmem>>, vector<1x8x32xf32>
    %10 = vector.shape_cast %9 : vector<1x8x32xf32> to vector<8x32xf32>
    %c0_11 = arith.constant 0 : index
    %c0_12 = arith.constant 0 : index
    %c0_13 = arith.constant 0 : index
    %11 = vector.load %arg4[%c0_11, %c0_12, %c0_13] : memref<1x8x32xf32, #tpu.memory_space<vmem>>, vector<1x8x32xf32>
    %12 = vector.shape_cast %11 : vector<1x8x32xf32> to vector<8x32xf32>
    %13 = arith.addf %10, %12 : vector<8x32xf32>
    %c0_14 = arith.constant 0 : index
    %c0_15 = arith.constant 0 : index
    %c0_16 = arith.constant 0 : index
    %14 = vector.load %arg5[%c0_14, %c0_15, %c0_16] : memref<1x64x32xf32, #tpu.memory_space<vmem>>, vector<1x64x32xf32>
    %15 = vector.shape_cast %14 : vector<1x64x32xf32> to vector<64x32xf32>
    %16 = arith.addf %5, %15 : vector<64x32xf32>
    %c0_17 = arith.constant 0 : index
    %c0_18 = arith.constant 0 : index
    %17 = vector.load %arg6[%c0_17, %c0_18] : memref<32x16xf32, #tpu.memory_space<vmem>>, vector<32x16xf32>
    %cst = arith.constant dense<0.000000e+00> : vector<8x16xf32>
    %18 = tpu.matmul %13, %17, %cst {dimension_numbers = #tpu.dot_dimension_numbers<[1], [0], [0], [1], [0, 0, 1, 1], [], []>} : vector<8x32xf32>, vector<32x16xf32>, vector<8x16xf32> -> vector<8x16xf32>
    %c0_19 = arith.constant 0 : index
    %c0_20 = arith.constant 0 : index
    %19 = vector.load %arg7[%c0_19, %c0_20] : memref<1x16xf32, #tpu.memory_space<vmem>>, vector<1x16xf32>
    %20 = vector.broadcast %19 : vector<1x16xf32> to vector<8x16xf32>
    %21 = arith.addf %18, %20 : vector<8x16xf32>
    %c0_21 = arith.constant 0 : index
    %c0_22 = arith.constant 0 : index
    %22 = vector.load %arg8[%c0_21, %c0_22] : memref<32x16xf32, #tpu.memory_space<vmem>>, vector<32x16xf32>
    %cst_23 = arith.constant dense<0.000000e+00> : vector<64x16xf32>
    %23 = tpu.matmul %16, %22, %cst_23 {dimension_numbers = #tpu.dot_dimension_numbers<[1], [0], [0], [1], [0, 0, 1, 1], [], []>} : vector<64x32xf32>, vector<32x16xf32>, vector<64x16xf32> -> vector<64x16xf32>
    %c0_24 = arith.constant 0 : index
    %c0_25 = arith.constant 0 : index
    %24 = vector.load %arg9[%c0_24, %c0_25] : memref<1x16xf32, #tpu.memory_space<vmem>>, vector<1x16xf32>
    %25 = vector.broadcast %24 : vector<1x16xf32> to vector<64x16xf32>
    %26 = arith.addf %23, %25 : vector<64x16xf32>
    %c0_26 = arith.constant 0 : index
    %c0_27 = arith.constant 0 : index
    %27 = vector.load %arg10[%c0_26, %c0_27] : memref<32x16xf32, #tpu.memory_space<vmem>>, vector<32x16xf32>
    %cst_28 = arith.constant dense<0.000000e+00> : vector<64x16xf32>
    %28 = tpu.matmul %5, %27, %cst_28 {dimension_numbers = #tpu.dot_dimension_numbers<[1], [0], [0], [1], [0, 0, 1, 1], [], []>} : vector<64x32xf32>, vector<32x16xf32>, vector<64x16xf32> -> vector<64x16xf32>
    %c0_29 = arith.constant 0 : index
    %c0_30 = arith.constant 0 : index
    %29 = vector.load %arg11[%c0_29, %c0_30] : memref<1x16xf32, #tpu.memory_space<vmem>>, vector<1x16xf32>
    %30 = vector.broadcast %29 : vector<1x16xf32> to vector<64x16xf32>
    %31 = arith.addf %28, %30 : vector<64x16xf32>
    %32 = vector.extract_strided_slice %21 {offsets = [0, 0], sizes = [8, 8], strides = [1, 1]} : vector<8x16xf32> to vector<8x8xf32>
    %33 = vector.extract_strided_slice %26 {offsets = [0, 0], sizes = [64, 8], strides = [1, 1]} : vector<64x16xf32> to vector<64x8xf32>
    %34 = vector.extract_strided_slice %31 {offsets = [0, 0], sizes = [64, 8], strides = [1, 1]} : vector<64x16xf32> to vector<64x8xf32>
    %cst_31 = arith.constant dense<0.000000e+00> : vector<8x64xf32>
    %35 = tpu.matmul %32, %33, %cst_31 {dimension_numbers = #tpu.dot_dimension_numbers<[1], [1], [0], [0], [0, 0, 1, 0], [], []>} : vector<8x8xf32>, vector<64x8xf32>, vector<8x64xf32> -> vector<8x64xf32>
    %cst_32 = arith.constant 0.353553385 : f32
    %36 = vector.broadcast %cst_32 : f32 to vector<8x64xf32>
    %37 = arith.mulf %35, %36 : vector<8x64xf32>
    %cst_33 = arith.constant dense<0xFF800000> : vector<8xf32>
    %38 = vector.multi_reduction <maximumf>, %37, %cst_33 [1] : vector<8x64xf32> to vector<8xf32>
    %39 = vector.shape_cast %38 : vector<8xf32> to vector<8x1xf32>
    %40 = vector.broadcast %39 : vector<8x1xf32> to vector<8x64xf32>
    %41 = arith.subf %37, %40 : vector<8x64xf32>
    %42 = math.exp %41 : vector<8x64xf32>
    %cst_34 = arith.constant dense<0.000000e+00> : vector<8xf32>
    %43 = vector.multi_reduction <add>, %42, %cst_34 [1] : vector<8x64xf32> to vector<8xf32>
    %44 = vector.shape_cast %43 : vector<8xf32> to vector<8x1xf32>
    %45 = tpu.reciprocal %44 {approx = true} : vector<8x1xf32> -> vector<8x1xf32>
    %46 = vector.broadcast %45 : vector<8x1xf32> to vector<8x64xf32>
    %47 = arith.mulf %42, %46 : vector<8x64xf32>
    %cst_35 = arith.constant dense<0.000000e+00> : vector<8x8xf32>
    %48 = tpu.matmul %47, %34, %cst_35 {dimension_numbers = #tpu.dot_dimension_numbers<[1], [0], [0], [1], [0, 0, 1, 1], [], []>} : vector<8x64xf32>, vector<64x8xf32>, vector<8x8xf32> -> vector<8x8xf32>
    %c0_36 = arith.constant 0 : index
    %c0_37 = arith.constant 0 : index
    %49 = vector.load %arg12[%c0_36, %c0_37] : memref<16x32xf32, #tpu.memory_space<vmem>>, vector<8x32xf32>
    %cst_38 = arith.constant dense<0.000000e+00> : vector<8x32xf32>
    %50 = tpu.matmul %48, %49, %cst_38 {dimension_numbers = #tpu.dot_dimension_numbers<[1], [0], [0], [1], [0, 0, 1, 1], [], []>} : vector<8x8xf32>, vector<8x32xf32>, vector<8x32xf32> -> vector<8x32xf32>
    %51 = vector.extract_strided_slice %21 {offsets = [0, 8], sizes = [8, 8], strides = [1, 1]} : vector<8x16xf32> to vector<8x8xf32>
    %52 = vector.extract_strided_slice %26 {offsets = [0, 8], sizes = [64, 8], strides = [1, 1]} : vector<64x16xf32> to vector<64x8xf32>
    %53 = vector.extract_strided_slice %31 {offsets = [0, 8], sizes = [64, 8], strides = [1, 1]} : vector<64x16xf32> to vector<64x8xf32>
    %cst_39 = arith.constant dense<0.000000e+00> : vector<8x64xf32>
    %54 = tpu.matmul %51, %52, %cst_39 {dimension_numbers = #tpu.dot_dimension_numbers<[1], [1], [0], [0], [0, 0, 1, 0], [], []>} : vector<8x8xf32>, vector<64x8xf32>, vector<8x64xf32> -> vector<8x64xf32>
    %cst_40 = arith.constant 0.353553385 : f32
    %55 = vector.broadcast %cst_40 : f32 to vector<8x64xf32>
    %56 = arith.mulf %54, %55 : vector<8x64xf32>
    %cst_41 = arith.constant dense<0xFF800000> : vector<8xf32>
    %57 = vector.multi_reduction <maximumf>, %56, %cst_41 [1] : vector<8x64xf32> to vector<8xf32>
    %58 = vector.shape_cast %57 : vector<8xf32> to vector<8x1xf32>
    %59 = vector.broadcast %58 : vector<8x1xf32> to vector<8x64xf32>
    %60 = arith.subf %56, %59 : vector<8x64xf32>
    %61 = math.exp %60 : vector<8x64xf32>
    %cst_42 = arith.constant dense<0.000000e+00> : vector<8xf32>
    %62 = vector.multi_reduction <add>, %61, %cst_42 [1] : vector<8x64xf32> to vector<8xf32>
    %63 = vector.shape_cast %62 : vector<8xf32> to vector<8x1xf32>
    %64 = tpu.reciprocal %63 {approx = true} : vector<8x1xf32> -> vector<8x1xf32>
    %65 = vector.broadcast %64 : vector<8x1xf32> to vector<8x64xf32>
    %66 = arith.mulf %61, %65 : vector<8x64xf32>
    %cst_43 = arith.constant dense<0.000000e+00> : vector<8x8xf32>
    %67 = tpu.matmul %66, %53, %cst_43 {dimension_numbers = #tpu.dot_dimension_numbers<[1], [0], [0], [1], [0, 0, 1, 1], [], []>} : vector<8x64xf32>, vector<64x8xf32>, vector<8x8xf32> -> vector<8x8xf32>
    %c8 = arith.constant 8 : index
    %c0_44 = arith.constant 0 : index
    %68 = vector.load %arg12[%c8, %c0_44] : memref<16x32xf32, #tpu.memory_space<vmem>>, vector<8x32xf32>
    %cst_45 = arith.constant dense<0.000000e+00> : vector<8x32xf32>
    %69 = tpu.matmul %67, %68, %cst_45 {dimension_numbers = #tpu.dot_dimension_numbers<[1], [0], [0], [1], [0, 0, 1, 1], [], []>} : vector<8x8xf32>, vector<8x32xf32>, vector<8x32xf32> -> vector<8x32xf32>
    %70 = arith.addf %50, %69 : vector<8x32xf32>
    %c0_46 = arith.constant 0 : index
    %c0_47 = arith.constant 0 : index
    %71 = vector.load %arg13[%c0_46, %c0_47] : memref<1x32xf32, #tpu.memory_space<vmem>>, vector<1x32xf32>
    %72 = vector.broadcast %71 : vector<1x32xf32> to vector<8x32xf32>
    %73 = arith.addf %70, %72 : vector<8x32xf32>
    %74 = vector.extract_strided_slice %73 {offsets = [4, 0], sizes = [1, 32], strides = [1, 1]} : vector<8x32xf32> to vector<1x32xf32>
    %c0_48 = arith.constant 0 : index
    %c0_49 = arith.constant 0 : index
    %75 = vector.load %arg14[%c0_48, %c0_49] : memref<1x32xf32, #tpu.memory_space<vmem>>, vector<1x32xf32>
    %c0_50 = arith.constant 0 : index
    %c0_51 = arith.constant 0 : index
    %76 = vector.load %arg16[%c0_50, %c0_51] : memref<64x8xf32, #tpu.memory_space<vmem>>, vector<32x8xf32>
    %cst_52 = arith.constant dense<0.000000e+00> : vector<1x8xf32>
    %77 = tpu.matmul %75, %76, %cst_52 {dimension_numbers = #tpu.dot_dimension_numbers<[1], [0], [0], [1], [0, 0, 1, 1], [], []>} : vector<1x32xf32>, vector<32x8xf32>, vector<1x8xf32> -> vector<1x8xf32>
    %c32 = arith.constant 32 : index
    %c0_53 = arith.constant 0 : index
    %78 = vector.load %arg16[%c32, %c0_53] : memref<64x8xf32, #tpu.memory_space<vmem>>, vector<32x8xf32>
    %cst_54 = arith.constant dense<0.000000e+00> : vector<1x8xf32>
    %79 = tpu.matmul %74, %78, %cst_54 {dimension_numbers = #tpu.dot_dimension_numbers<[1], [0], [0], [1], [0, 0, 1, 1], [], []>} : vector<1x32xf32>, vector<32x8xf32>, vector<1x8xf32> -> vector<1x8xf32>
    %80 = arith.addf %77, %79 : vector<1x8xf32>
    %c0_55 = arith.constant 0 : index
    %c0_56 = arith.constant 0 : index
    %81 = vector.load %arg17[%c0_55, %c0_56] : memref<1x8xf32, #tpu.memory_space<vmem>>, vector<1x8xf32>
    %82 = arith.addf %80, %81 : vector<1x8xf32>
    %cst_57 = arith.constant 0.000000e+00 : f32
    %83 = vector.broadcast %cst_57 : f32 to vector<1x8xf32>
    %84 = arith.maximumf %82, %83 : vector<1x8xf32>
    %c0_58 = arith.constant 0 : index
    %c0_59 = arith.constant 0 : index
    %85 = vector.load %arg18[%c0_58, %c0_59] : memref<8x8xf32, #tpu.memory_space<vmem>>, vector<8x8xf32>
    %cst_60 = arith.constant dense<0.000000e+00> : vector<1x8xf32>
    %86 = tpu.matmul %84, %85, %cst_60 {dimension_numbers = #tpu.dot_dimension_numbers<[1], [0], [0], [1], [0, 0, 1, 1], [], []>} : vector<1x8xf32>, vector<8x8xf32>, vector<1x8xf32> -> vector<1x8xf32>
    %c0_61 = arith.constant 0 : index
    %c0_62 = arith.constant 0 : index
    %87 = vector.load %arg19[%c0_61, %c0_62] : memref<1x8xf32, #tpu.memory_space<vmem>>, vector<1x8xf32>
    %88 = arith.addf %86, %87 : vector<1x8xf32>
    %cst_63 = arith.constant 0.000000e+00 : f32
    %89 = vector.broadcast %cst_63 : f32 to vector<1x8xf32>
    %90 = arith.maximumf %88, %89 : vector<1x8xf32>
    %c0_64 = arith.constant 0 : index
    %c0_65 = arith.constant 0 : index
    %91 = vector.load %arg20[%c0_64, %c0_65] : memref<8x32xf32, #tpu.memory_space<vmem>>, vector<8x32xf32>
    %cst_66 = arith.constant dense<0.000000e+00> : vector<1x32xf32>
    %92 = tpu.matmul %90, %91, %cst_66 {dimension_numbers = #tpu.dot_dimension_numbers<[1], [0], [0], [1], [0, 0, 1, 1], [], []>} : vector<1x8xf32>, vector<8x32xf32>, vector<1x32xf32> -> vector<1x32xf32>
    %c0_67 = arith.constant 0 : index
    %c0_68 = arith.constant 0 : index
    %93 = vector.load %arg21[%c0_67, %c0_68] : memref<1x32xf32, #tpu.memory_space<vmem>>, vector<1x32xf32>
    %94 = arith.addf %92, %93 : vector<1x32xf32>
    %c0_69 = arith.constant 0 : index
    %c0_70 = arith.constant 0 : index
    %95 = vector.load %arg15[%c0_69, %c0_70] : memref<1x32xf32, #tpu.memory_space<vmem>>, vector<1x32xf32>
    %c0_71 = arith.constant 0 : index
    %c0_72 = arith.constant 0 : index
    %96 = vector.load %arg22[%c0_71, %c0_72] : memref<64x8xf32, #tpu.memory_space<vmem>>, vector<32x8xf32>
    %cst_73 = arith.constant dense<0.000000e+00> : vector<1x8xf32>
    %97 = tpu.matmul %95, %96, %cst_73 {dimension_numbers = #tpu.dot_dimension_numbers<[1], [0], [0], [1], [0, 0, 1, 1], [], []>} : vector<1x32xf32>, vector<32x8xf32>, vector<1x8xf32> -> vector<1x8xf32>
    %c32_74 = arith.constant 32 : index
    %c0_75 = arith.constant 0 : index
    %98 = vector.load %arg22[%c32_74, %c0_75] : memref<64x8xf32, #tpu.memory_space<vmem>>, vector<32x8xf32>
    %cst_76 = arith.constant dense<0.000000e+00> : vector<1x8xf32>
    %99 = tpu.matmul %74, %98, %cst_76 {dimension_numbers = #tpu.dot_dimension_numbers<[1], [0], [0], [1], [0, 0, 1, 1], [], []>} : vector<1x32xf32>, vector<32x8xf32>, vector<1x8xf32> -> vector<1x8xf32>
    %100 = arith.addf %97, %99 : vector<1x8xf32>
    %c0_77 = arith.constant 0 : index
    %c0_78 = arith.constant 0 : index
    %101 = vector.load %arg23[%c0_77, %c0_78] : memref<1x8xf32, #tpu.memory_space<vmem>>, vector<1x8xf32>
    %102 = arith.addf %100, %101 : vector<1x8xf32>
    %cst_79 = arith.constant 0.000000e+00 : f32
    %103 = vector.broadcast %cst_79 : f32 to vector<1x8xf32>
    %104 = arith.maximumf %102, %103 : vector<1x8xf32>
    %c0_80 = arith.constant 0 : index
    %c0_81 = arith.constant 0 : index
    %105 = vector.load %arg24[%c0_80, %c0_81] : memref<8x8xf32, #tpu.memory_space<vmem>>, vector<8x8xf32>
    %cst_82 = arith.constant dense<0.000000e+00> : vector<1x8xf32>
    %106 = tpu.matmul %104, %105, %cst_82 {dimension_numbers = #tpu.dot_dimension_numbers<[1], [0], [0], [1], [0, 0, 1, 1], [], []>} : vector<1x8xf32>, vector<8x8xf32>, vector<1x8xf32> -> vector<1x8xf32>
    %c0_83 = arith.constant 0 : index
    %c0_84 = arith.constant 0 : index
    %107 = vector.load %arg25[%c0_83, %c0_84] : memref<1x8xf32, #tpu.memory_space<vmem>>, vector<1x8xf32>
    %108 = arith.addf %106, %107 : vector<1x8xf32>
    %cst_85 = arith.constant 0.000000e+00 : f32
    %109 = vector.broadcast %cst_85 : f32 to vector<1x8xf32>
    %110 = arith.maximumf %108, %109 : vector<1x8xf32>
    %c0_86 = arith.constant 0 : index
    %c0_87 = arith.constant 0 : index
    %111 = vector.load %arg26[%c0_86, %c0_87] : memref<8x32xf32, #tpu.memory_space<vmem>>, vector<8x32xf32>
    %cst_88 = arith.constant dense<0.000000e+00> : vector<1x32xf32>
    %112 = tpu.matmul %110, %111, %cst_88 {dimension_numbers = #tpu.dot_dimension_numbers<[1], [0], [0], [1], [0, 0, 1, 1], [], []>} : vector<1x8xf32>, vector<8x32xf32>, vector<1x32xf32> -> vector<1x32xf32>
    %c0_89 = arith.constant 0 : index
    %c0_90 = arith.constant 0 : index
    %113 = vector.load %arg27[%c0_89, %c0_90] : memref<1x32xf32, #tpu.memory_space<vmem>>, vector<1x32xf32>
    %114 = arith.addf %112, %113 : vector<1x32xf32>
    %115 = tpu.concatenate %94, %114, %74 in 0 : vector<1x32xf32>, vector<1x32xf32>, vector<1x32xf32> -> vector<3x32xf32>
    %cst_91 = arith.constant dense<0.000000e+00> : vector<3x64xf32>
    %116 = tpu.matmul %115, %5, %cst_91 {dimension_numbers = #tpu.dot_dimension_numbers<[1], [1], [0], [0], [0, 0, 1, 0], [], []>} : vector<3x32xf32>, vector<64x32xf32>, vector<3x64xf32> -> vector<3x64xf32>
    %117 = vector.extract_strided_slice %116 {offsets = [0, 0], sizes = [1, 64], strides = [1, 1]} : vector<3x64xf32> to vector<1x64xf32>
    %118 = arith.negf %117 : vector<1x64xf32>
    %119 = math.exp %118 : vector<1x64xf32>
    %cst_92 = arith.constant 1.000000e+00 : f32
    %120 = vector.broadcast %cst_92 : f32 to vector<1x64xf32>
    %121 = arith.addf %120, %119 : vector<1x64xf32>
    %122 = arith.divf %120, %121 : vector<1x64xf32>
    %123 = vector.extract_strided_slice %116 {offsets = [1, 0], sizes = [1, 64], strides = [1, 1]} : vector<3x64xf32> to vector<1x64xf32>
    %124 = vector.extract_strided_slice %116 {offsets = [2, 0], sizes = [1, 64], strides = [1, 1]} : vector<3x64xf32> to vector<1x64xf32>
    %cst_93 = arith.constant 5.000000e-01 : f32
    %125 = vector.broadcast %cst_93 : f32 to vector<1x64xf32>
    %126 = arith.cmpf oge, %122, %125 : vector<1x64xf32>
    %127 = arith.select %126, %123, %124 : vector<1x64xi1>, vector<1x64xf32>
    %128 = tpu.concatenate %122, %123, %124, %127 in 0 : vector<1x64xf32>, vector<1x64xf32>, vector<1x64xf32>, vector<1x64xf32> -> vector<4x64xf32>
    %c0_94 = arith.constant 0 : index
    %c0_95 = arith.constant 0 : index
    %c0_96 = arith.constant 0 : index
    %129 = vector.load %arg30[%c0_94, %c0_95, %c0_96] : memref<1x4x64xf32, #tpu.memory_space<vmem>>, vector<1x4x64xf32>
    %130 = vector.shape_cast %129 : vector<1x4x64xf32> to vector<4x64xf32>
    %131 = vector.shape_cast %128 : vector<4x64xf32> to vector<1x4x64xf32>
    tpu.vector_store %arg30[%c0_94, %c0_95, %c0_96], %131 {strides = array<i32>} : memref<1x4x64xf32, #tpu.memory_space<vmem>>, vector<1x4x64xf32>,
    %132 = tpu.iota {dimensions = array<i32: 0>} : vector<8x32xi32>
    %c4_i32 = arith.constant 4 : i32
    %133 = vector.broadcast %c4_i32 : i32 to vector<8x32xi32>
    %134 = arith.cmpi eq, %132, %133 : vector<8x32xi32>
    %135 = vector.shape_cast %114 : vector<1x32xf32> to vector<1x32xf32>
    %136 = vector.broadcast %135 : vector<1x32xf32> to vector<8x32xf32>
    %137 = arith.select %134, %136, %73 : vector<8x32xi1>, vector<8x32xf32>
    %c0_97 = arith.constant 0 : index
    %c0_98 = arith.constant 0 : index
    %c0_99 = arith.constant 0 : index
    %138 = vector.load %arg28[%c0_97, %c0_98, %c0_99] : memref<1x8x32xf32, #tpu.memory_space<vmem>>, vector<1x8x32xf32>
    %139 = vector.shape_cast %138 : vector<1x8x32xf32> to vector<8x32xf32>
    %140 = vector.shape_cast %137 : vector<8x32xf32> to vector<1x8x32xf32>
    tpu.vector_store %arg28[%c0_97, %c0_98, %c0_99], %140 {strides = array<i32>} : memref<1x8x32xf32, #tpu.memory_space<vmem>>, vector<1x8x32xf32>,
    return
  }
  func.func @transform_0(%arg0: i32) -> (i32, i32, i32) {
    %c0_i32 = arith.constant 0 : i32
    %c0_i32_0 = arith.constant 0 : i32
    %c0_i32_1 = arith.constant 0 : i32
    return %arg0, %c0_i32, %c0_i32_0 : i32, i32, i32
  }
  func.func @transform_1(%arg0: i32) -> (i32, i32, i32) {
    %c0_i32 = arith.constant 0 : i32
    %c0_i32_0 = arith.constant 0 : i32
    %c0_i32_1 = arith.constant 0 : i32
    return %arg0, %c0_i32, %c0_i32_0 : i32, i32, i32
  }
  func.func @transform_2(%arg0: i32) -> (i32, i32, i32) {
    %c0_i32 = arith.constant 0 : i32
    %c0_i32_0 = arith.constant 0 : i32
    %c0_i32_1 = arith.constant 0 : i32
    return %arg0, %c0_i32, %c0_i32_0 : i32, i32, i32
  }
  func.func @transform_3(%arg0: i32) -> (i32, i32, i32) {
    %c0_i32 = arith.constant 0 : i32
    %c0_i32_0 = arith.constant 0 : i32
    %c0_i32_1 = arith.constant 0 : i32
    return %arg0, %c0_i32, %c0_i32_0 : i32, i32, i32
  }
  func.func @transform_4(%arg0: i32) -> (i32, i32, i32) {
    %c0_i32 = arith.constant 0 : i32
    %c0_i32_0 = arith.constant 0 : i32
    %c0_i32_1 = arith.constant 0 : i32
    return %arg0, %c0_i32, %c0_i32_0 : i32, i32, i32
  }
  func.func @transform_5(%arg0: i32) -> (i32, i32) {
    %c0_i32 = arith.constant 0 : i32
    %c0_i32_0 = arith.constant 0 : i32
    %c0_i32_1 = arith.constant 0 : i32
    return %c0_i32, %c0_i32_0 : i32, i32
  }
  func.func @transform_6(%arg0: i32) -> (i32, i32) {
    %c0_i32 = arith.constant 0 : i32
    %c0_i32_0 = arith.constant 0 : i32
    %c0_i32_1 = arith.constant 0 : i32
    return %c0_i32, %c0_i32_0 : i32, i32
  }
  func.func @transform_7(%arg0: i32) -> (i32, i32) {
    %c0_i32 = arith.constant 0 : i32
    %c0_i32_0 = arith.constant 0 : i32
    %c0_i32_1 = arith.constant 0 : i32
    return %c0_i32, %c0_i32_0 : i32, i32
  }
  func.func @transform_8(%arg0: i32) -> (i32, i32) {
    %c0_i32 = arith.constant 0 : i32
    %c0_i32_0 = arith.constant 0 : i32
    %c0_i32_1 = arith.constant 0 : i32
    return %c0_i32, %c0_i32_0 : i32, i32
  }
  func.func @transform_9(%arg0: i32) -> (i32, i32) {
    %c0_i32 = arith.constant 0 : i32
    %c0_i32_0 = arith.constant 0 : i32
    %c0_i32_1 = arith.constant 0 : i32
    return %c0_i32, %c0_i32_0 : i32, i32
  }
  func.func @transform_10(%arg0: i32) -> (i32, i32) {
    %c0_i32 = arith.constant 0 : i32
    %c0_i32_0 = arith.constant 0 : i32
    %c0_i32_1 = arith.constant 0 : i32
    return %c0_i32, %c0_i32_0 : i32, i32
  }
  func.func @transform_11(%arg0: i32) -> (i32, i32) {
    %c0_i32 = arith.constant 0 : i32
    %c0_i32_0 = arith.constant 0 : i32
    %c0_i32_1 = arith.constant 0 : i32
    return %c0_i32, %c0_i32_0 : i32, i32
  }
  func.func @transform_12(%arg0: i32) -> (i32, i32) {
    %c0_i32 = arith.constant 0 : i32
    %c0_i32_0 = arith.constant 0 : i32
    %c0_i32_1 = arith.constant 0 : i32
    return %c0_i32, %c0_i32_0 : i32, i32
  }
  func.func @transform_13(%arg0: i32) -> (i32, i32) {
    %c0_i32 = arith.constant 0 : i32
    %c0_i32_0 = arith.constant 0 : i32
    %c0_i32_1 = arith.constant 0 : i32
    return %c0_i32, %c0_i32_0 : i32, i32
  }
  func.func @transform_14(%arg0: i32) -> (i32, i32) {
    %c0_i32 = arith.constant 0 : i32
    %c0_i32_0 = arith.constant 0 : i32
    %c0_i32_1 = arith.constant 0 : i32
    return %c0_i32, %c0_i32_0 : i32, i32
  }
  func.func @transform_15(%arg0: i32) -> (i32, i32) {
    %c0_i32 = arith.constant 0 : i32
    %c0_i32_0 = arith.constant 0 : i32
    %c0_i32_1 = arith.constant 0 : i32
    return %c0_i32, %c0_i32_0 : i32, i32
  }
  func.func @transform_16(%arg0: i32) -> (i32, i32) {
    %c0_i32 = arith.constant 0 : i32
    %c0_i32_0 = arith.constant 0 : i32
    %c0_i32_1 = arith.constant 0 : i32
    return %c0_i32, %c0_i32_0 : i32, i32
  }
  func.func @transform_17(%arg0: i32) -> (i32, i32) {
    %c0_i32 = arith.constant 0 : i32
    %c0_i32_0 = arith.constant 0 : i32
    %c0_i32_1 = arith.constant 0 : i32
    return %c0_i32, %c0_i32_0 : i32, i32
  }
  func.func @transform_18(%arg0: i32) -> (i32, i32) {
    %c0_i32 = arith.constant 0 : i32
    %c0_i32_0 = arith.constant 0 : i32
    %c0_i32_1 = arith.constant 0 : i32
    return %c0_i32, %c0_i32_0 : i32, i32
  }
  func.func @transform_19(%arg0: i32) -> (i32, i32) {
    %c0_i32 = arith.constant 0 : i32
    %c0_i32_0 = arith.constant 0 : i32
    %c0_i32_1 = arith.constant 0 : i32
    return %c0_i32, %c0_i32_0 : i32, i32
  }
  func.func @transform_20(%arg0: i32) -> (i32, i32) {
    %c0_i32 = arith.constant 0 : i32
    %c0_i32_0 = arith.constant 0 : i32
    %c0_i32_1 = arith.constant 0 : i32
    return %c0_i32, %c0_i32_0 : i32, i32
  }
  func.func @transform_21(%arg0: i32) -> (i32, i32) {
    %c0_i32 = arith.constant 0 : i32
    %c0_i32_0 = arith.constant 0 : i32
    %c0_i32_1 = arith.constant 0 : i32
    return %c0_i32, %c0_i32_0 : i32, i32
  }
  func.func @transform_22(%arg0: i32) -> (i32, i32) {
    %c0_i32 = arith.constant 0 : i32
    %c0_i32_0 = arith.constant 0 : i32
    %c0_i32_1 = arith.constant 0 : i32
    return %c0_i32, %c0_i32_0 : i32, i32
  }
  func.func @transform_23(%arg0: i32) -> (i32, i32) {
    %c0_i32 = arith.constant 0 : i32
    %c0_i32_0 = arith.constant 0 : i32
    %c0_i32_1 = arith.constant 0 : i32
    return %c0_i32, %c0_i32_0 : i32, i32
  }
  func.func @transform_24(%arg0: i32) -> (i32, i32) {
    %c0_i32 = arith.constant 0 : i32
    %c0_i32_0 = arith.constant 0 : i32
    %c0_i32_1 = arith.constant 0 : i32
    return %c0_i32, %c0_i32_0 : i32, i32
  }
  func.func @transform_25(%arg0: i32) -> (i32, i32) {
    %c0_i32 = arith.constant 0 : i32
    %c0_i32_0 = arith.constant 0 : i32
    %c0_i32_1 = arith.constant 0 : i32
    return %c0_i32, %c0_i32_0 : i32, i32
  }
  func.func @transform_26(%arg0: i32) -> (i32, i32) {
    %c0_i32 = arith.constant 0 : i32
    %c0_i32_0 = arith.constant 0 : i32
    %c0_i32_1 = arith.constant 0 : i32
    return %c0_i32, %c0_i32_0 : i32, i32
  }
  func.func @transform_27(%arg0: i32) -> (i32, i32, i32) {
    %c0_i32 = arith.constant 0 : i32
    %c0_i32_0 = arith.constant 0 : i32
    %c0_i32_1 = arith.constant 0 : i32
    return %arg0, %c0_i32, %c0_i32_0 : i32, i32, i32
  }
  func.func @transform_28(%arg0: i32) -> (i32, i32, i32) {
    %c0_i32 = arith.constant 0 : i32
    %c0_i32_0 = arith.constant 0 : i32
    %c0_i32_1 = arith.constant 0 : i32
    return %arg0, %c0_i32, %c0_i32_0 : i32, i32, i32
  }
  func.func @transform_29(%arg0: i32) -> (i32, i32, i32) {
    %c0_i32 = arith.constant 0 : i32
    %c0_i32_0 = arith.constant 0 : i32
    %c0_i32_1 = arith.constant 0 : i32
    return %arg0, %c0_i32, %c0_i32_0 : i32, i32, i32
  }
}

</mosaic_0001>

<bundles_post_ra>
// kernel: tpu_custom_call.1
= control target key start
LH: loop header
LB: loop body
LE: loop exit
PB: predicated region body
PF: predicated region fallthrough
CT: control target
= control target key end

     0   :  { %s5537_s6 = smov 1   ;;  %s5538_s10 = smov 2   ;;  %s6710_s0 = inlined_call_operand.smem [shape: u32[30], index: -1, kind: input, shape index: {}] }
   0x1   :  { %s5612_s5 = sld [smem:[%s6710_s0]]   ;;  %s5539_s14 = smov 3  }
   0x2   :  { %s5617_s9 = sld [smem:[%s6710_s0 + %s5537_s6]]   ;;  %s5540_s18 = smov 4  }
   0x3   :  { %s5622_s13 = sld [smem:[%s6710_s0 + %s5538_s10]]   ;;  %s5541_s22 = smov 5  }
   0x4   :  { %s5627_s17 = sld [smem:[%s6710_s0 + %s5539_s14]]   ;;  %s5542_s26 = smov 6  }
   0x5   :  { %s5632_s21 = sld [smem:[%s6710_s0 + %s5540_s18]]   ;;  %s5543_s30 = smov 7  }
   0x6   :  { %s5637_s25 = sld [smem:[%s6710_s0 + %s5541_s22]]   ;;  %s5544_s4 = smov 8  }
   0x7   :  { %6775 = sst [smem:[#allocation64_spill]] %s5612_s5  ;;  %s5545_s10 = smov 9  }
   0x8   :  { %6776 = sst [smem:[#allocation65_spill]] %s5617_s9  ;;  %s5546_s15 = smov 10  }
   0x9   :  { %s5642_s29 = sld [smem:[%s6710_s0 + %s5542_s26]]   ;;  %s5547_s20 = smov 11  }
   0xa   :  { %6777 = sst [smem:[#allocation66_spill]] %s5627_s17  ;;  %s5548_s26 = smov 12  }
   0xb   :  { %s5647_s3 = sld [smem:[%s6710_s0 + %s5543_s30]]   ;;  %s5549_s1 = smov 13  }
   0xc   :  { %6778 = sst [smem:[#allocation67_spill]] %s5637_s25  ;;  %s5550_s7 = smov 14  }
   0xd   :  { %s5652_s8 = sld [smem:[%s6710_s0 + %s5544_s4]]   ;;  %s5552_s22 = smov 16  }
   0xe   :  { %s5657_s14 = sld [smem:[%s6710_s0 + %s5545_s10]]   ;;  %s5553_s28 = smov 17  }
   0xf   :  { %6779 = sst [smem:[#allocation68_spill]] %s5642_s29 }
  0x10   :  { %s5662_s19 = sld [smem:[%s6710_s0 + %s5546_s15]]   ;;  %s5551_s15 = smov 15  }
  0x11   :  { %6780 = sst [smem:[#allocation69_spill]] %s5647_s3 }
  0x12   :  { %s5667_s24 = sld [smem:[%s6710_s0 + %s5547_s20]]  }
  0x13   :  { %6781 = sst [smem:[#allocation70_spill]] %s5652_s8 }
  0x14   :  { %6782 = sst [smem:[#allocation71_spill]] %s5657_s14 }
  0x15   :  { %s5672_s30 = sld [smem:[%s6710_s0 + %s5548_s26]]  }
  0x16   :  { %6783 = sst [smem:[#allocation72_spill]] %s5662_s19 }
  0x17   :  { %s5677_s6 = sld [smem:[%s6710_s0 + %s5549_s1]]  }
  0x18   :  { %6784 = sst [smem:[#allocation73_spill]] %s5667_s24 }
  0x19   :  { %s5682_s12 = sld [smem:[%s6710_s0 + %s5550_s7]]   ;;  %s5554_s7 = smov 18  }
  0x1a   :  { %s5687_s20 = sld [smem:[%s6710_s0 + %s5551_s15]]   ;;  %s5555_s15 = smov 19  }
  0x1b   :  { %6785 = sst [smem:[#allocation74_spill]] %s5672_s30 }
  0x1c   :  { %s5692_s27 = sld [smem:[%s6710_s0 + %s5552_s22]]   ;;  %s5556_s22 = smov 20  }
  0x1d   :  { %6786 = sst [smem:[#allocation75_spill]] %s5677_s6 }
  0x1e   :  { %s5697_s4 = sld [smem:[%s6710_s0 + %s5553_s28]]   ;;  %s5557_s28 = smov 21  }
  0x1f   :  { %6787 = sst [smem:[#allocation76_spill]] %s5682_s12 }
  0x20   :  { %6788 = sst [smem:[#allocation77_spill]] %s5687_s20 }
  0x21   :  { %s5702_s5 = sld [smem:[%s6710_s0 + %s5554_s7]]   ;;  %s5558_s7 = smov 22  }
  0x22   :  { %6789 = sst [smem:[#allocation78_spill]] %s5692_s27 }
  0x23   :  { %s5707_s12 = sld [smem:[%s6710_s0 + %s5555_s15]]   ;;  %s5559_s15 = smov 23  }
  0x24   :  { %6790 = sst [smem:[#allocation79_spill]] %s5697_s4 }
  0x25   :  { %s5712_s27 = sld [smem:[%s6710_s0 + %s5556_s22]]   ;;  %s5560_s22 = smov 24  }
  0x26   :  { %s5717_s30 = sld [smem:[%s6710_s0 + %s5557_s28]]   ;;  %s5561_s28 = smov 25  }
  0x27   :  { %6791 = sst [smem:[#allocation80_spill]] %s5702_s5 }
  0x28   :  { %s5722_s5 = sld [smem:[%s6710_s0 + %s5558_s7]]   ;;  %s5562_s7 = smov 26  }
  0x29   :  { %6792 = sst [smem:[#allocation81_spill]] %s5707_s12 }
  0x2a   :  { %s5727_s19 = sld [smem:[%s6710_s0 + %s5559_s15]]   ;;  %s5563_s15 = smov 27  }
  0x2b   :  { %6793 = sst [smem:[#allocation82_spill]] %s5712_s27 }
  0x2c   :  { %6794 = sst [smem:[#allocation83_spill]] %s5717_s30 }
  0x2d   :  { %s5732_s27 = sld [smem:[%s6710_s0 + %s5560_s22]]   ;;  %s5564_s22 = smov 28  }
  0x2e   :  { %6795 = sst [smem:[#allocation84_spill]] %s5722_s5 }
  0x2f   :  { %s5737_s8 = sld [smem:[%s6710_s0 + %s5561_s28]]   ;;  %s5565_s28 = smov 29  }
  0x30   :  { %6796 = sst [smem:[#allocation85_spill]] %s5727_s19 }
  0x31   :  { %s5742_s5 = sld [smem:[%s6710_s0 + %s5562_s7]]  }
  0x32   :  { %s5747_s29 = sld [smem:[%s6710_s0 + %s5563_s15]]  }
  0x33   :  { %6797 = sst [smem:[#allocation86_spill]] %s5732_s27 }
  0x34   :  { %s5752_s27 = sld [smem:[%s6710_s0 + %s5564_s22]]  }
  0x35   :  { %6798 = sst [smem:[#allocation87_spill]] %s5737_s8 }
  0x36   :  { %s5757_s17 = sld [smem:[%s6710_s0 + %s5565_s28]]  }
  0x38   :  { %6799 = sst [smem:[#allocation88_spill]] %s5747_s29 }
  0x3a   :  { %6800 = sst [smem:[#allocation89_spill]] %s5752_s27 }
  0x3c   :  { %6801 = sst [smem:[#allocation90_spill]] %s5757_s17 }
  0x3d   :  { %65 = vsyncpa [#allocation3], 0 }
  0x3e   :  { %67 = vsyncpa [#allocation3 + $0x1], 0 }
  0x3f   :  { %68 = vsyncpa [#allocation6], 0 }
  0x40   :  { %70 = vsyncpa [#allocation6 + $0x1], 0 }
  0x41   :  { %71 = vsyncpa [#allocation9], 0 }
  0x42   :  { %73 = vsyncpa [#allocation9 + $0x1], 0 }
  0x43   :  { %74 = vsyncpa [#allocation12], 0 }
  0x44   :  { %75 = vsyncpa [#allocation15], 0 }
  0x45   :  { %76 = vsyncpa [#allocation18], 0 }
  0x46   :  { %77 = vsyncpa [#allocation21], 0 }
  0x47   :  { %78 = vsyncpa [#allocation24], 0 }
  0x48   :  { %79 = vsyncpa [#allocation27], 0 }
  0x49   :  { %80 = vsyncpa [#allocation30], 0 }
  0x4a   :  { %81 = vsyncpa [#allocation33], 0 }
  0x4b   :  { %82 = vsyncpa [#allocation36], 0 }
  0x4c   :  { %83 = vsyncpa [#allocation39], 0 }
  0x4d   :  { %84 = vsyncpa [#allocation42], 0 }
  0x4e   :  { %85 = vsyncpa [#allocation4], 0 }
  0x4f   :  { %87 = vsyncpa [#allocation4 + $0x1], 0 }
  0x50   :  { %88 = vsyncpa [#allocation46], 0 }
  0x51   :  { %90 = vsyncpa [#allocation46 + $0x1], 0  ;;  %s5759_s0 = smov 0   ;;  %s5761_s7 = smov 0  }
  0x52   :  { %s5763_s10 = smov 0   ;;  %s5765_s11 = smov 0  }
  0x53 LB: > { %s6802_s9 = sld [smem:[#allocation65_spill]]  ;;  %s6803_s30 = sld [smem:[#allocation83_spill]]  ;;  %s5535_s11 = sphi %s5765_s11, %s6887_s11   ;;  %s5531_s10 = sphi %s5763_s10, %s6889_s10   ;;  %s5527_s7 = sphi %s5761_s7, %s6891_s7   ;;  %s5523_s0 = sphi %s5759_s0, %s6890_s0  }
  0x54   : > { %s6804_s24 = sld [smem:[#allocation73_spill]]  ;;  %s6805_s20 = sld [smem:[#allocation77_spill]] }
  0x55   : > { %s6806_s19 = sld [smem:[#allocation85_spill]]  ;;  %s6807_s14 = sld [smem:[#allocation71_spill]] }
  0x56   : > { %s6808_s12 = sld [smem:[#allocation81_spill]]  ;;  %s6809_s8 = sld [smem:[#allocation87_spill]] }
  0x57   : > { %s6810_s6 = sld [smem:[#allocation75_spill]]  ;;  %s6811_s4 = sld [smem:[#allocation79_spill]] }
  0x58   : > { %s6812_s25 = sld [smem:[#allocation67_spill]]  ;;  %s6813_s3 = sld [smem:[#allocation69_spill]] }
  0x59   : > { %6814 = sst [smem:[#allocation91_spill]] %s5523_s0  ;;  %s5566_s15 = smov [#allocation11]  }
  0x5a   : > { %6815 = sst [smem:[#allocation92_spill]] %s5531_s10  ;;  %s783_s16 = sshll.u32 %s5566_s15, 4  ;;  %s5785_s16 = int_to_ptr.vmem [resolvable:$true] %s783_s16 }
  0x5b   : > { %s5780_s18 = sadd.s32 4294967295, %s5535_s11   ;;  %p3619_p0 = scmp.ge.s32.totalorder %s5535_s11, 1 }
  0x5c   : > { %p6724_p1 = scmp.eq.s32.totalorder %s5780_s18, 0  ;;  %p771_p2 = scmp.lt.s32.totalorder %s5535_s11, 3 }
  0x5d   : > { %s5567_s23 = smov [#allocation14]   ;;  %s5568_s1 = smov [#allocation17]  }
  0x5e   : > { %p5787_p3 = pnand %p3619_p0, %p771_p2  ;;  %s807_s26 = sshll.u32 %s5567_s23, 4  ;;  %s5800_s26 = int_to_ptr.vmem [resolvable:$true] %s807_s26 }
  0x5f   : > { %s831_s2 = sshll.u32 %s5568_s1, 4  ;;  %s4591_s15 = scalar_lea.hbm %s6812_s25, 512  ;;  %s5802_s2 = int_to_ptr.vmem [resolvable:$true] %s831_s2 }
  0x60   : > { %s6816_s22 = scalar_select %p5787_p3, 1, 0 }
  0x61   : > { %p4309_p5 = pneg %p5787_p3  ;;  %p4592_p7 = scmp.ne.s32.totalorder %s6812_s25, %s4591_s15 }
  0x62   : > { %p4598_p11 = scmp.lt.u32.totalorder %s4591_s15, %s6812_s25 }
  0x63   : > { %p5796_p6 = pnand %p4309_p5, %p6724_p1 }
  0x65   : > { %s6817_s28 = scalar_select %p5796_p6, 1, 0 }
  0x66   : > { %p5808_p8 = pneg %p5796_p6 }
  0x68   : > { %s6818_s17 = scalar_select %p5808_p8, 1, 0 }
  0x69   : > { %p4594_p9 = pnand %p5808_p8, %p4592_p7 }
  0x6b   : > { %p4595_p10 = pneg %p4594_p9 }
  0x6d   : > { %p4600_p12 = pnand %p4598_p11, %p4595_p10 }
  0x6f   : > { %4603 = shalt.err (!%p4600_p12)
}
  0x70   : > { %s4604_s23 = scalar_lea.vmem %s5785_s16, 512  ;;  %p4612_p5 = scmp.lt.s32.totalorder %s5785_s16, %s5785_s16 }
  0x71   : > { %p4605_p13 = scmp.ne.s32.totalorder %s5785_s16, %s4604_s23  ;;  %p4613_p4 = scmp.lt.s32.totalorder %s4604_s23, %s4604_s23 }
  0x73   : > { %p4607_p0 = pnand %p4605_p13, %p5808_p8  ;;  %p4614_p1 = por %p4613_p4, %p4612_p5 }
  0x75   : > { %p4608_p2 = pneg %p4607_p0 }
  0x77   : > { %p4615_p3 = pnand %p4614_p1, %p4608_p2 }
  0x79   : > { %4618 = shalt.err (!%p4615_p3)
}
  0x7a   : > { %s6729_s1 = smov 128   ;;  %s6731_s15 = smov 8  }
  0x7b   : > { %4312 = dma.hbm_to_vmem [thread:$0]  (!%p5796_p6), %s6812_s25, 512, %s5785_s16, [#allocation12], %s6729_s1, %s6729_s1, %s6731_s15  }
  0x7c   : > { %s4619_s29 = scalar_lea.hbm %s6813_s3, 512 }
  0x7d   : > { %p4620_p7 = scmp.ne.s32.totalorder %s6813_s3, %s4619_s29  ;;  %p4626_p3 = scmp.lt.u32.totalorder %s4619_s29, %s6813_s3 }
  0x7f   : > { %p4622_p4 = pnand %p4620_p7, %p5808_p8 }
  0x81   : > { %p4623_p1 = pneg %p4622_p4 }
  0x83   : > { %p4628_p9 = pnand %p4626_p3, %p4623_p1 }
  0x85   : > { %4631 = shalt.err (!%p4628_p9)
}
  0x86   : > { %s4632_s23 = scalar_lea.vmem %s5800_s26, 512  ;;  %p4640_p13 = scmp.lt.s32.totalorder %s5800_s26, %s5800_s26 }
  0x87   : > { %p4633_p10 = scmp.ne.s32.totalorder %s5800_s26, %s4632_s23  ;;  %p4641_p0 = scmp.lt.s32.totalorder %s4632_s23, %s4632_s23 }
  0x89   : > { %p4635_p11 = pnand %p4633_p10, %p5808_p8  ;;  %p4642_p2 = por %p4641_p0, %p4640_p13 }
  0x8b   : > { %p4636_p12 = pneg %p4635_p11 }
  0x8d   : > { %p4643_p5 = pnand %p4642_p2, %p4636_p12 }
  0x8f   : > { %4646 = shalt.err (!%p4643_p5)
}
  0x90   : > { %4318 = dma.hbm_to_vmem [thread:$0]  (!%p5796_p6), %s6813_s3, 512, %s5800_s26, [#allocation15], %s6729_s1, %s6729_s1, %s6731_s15  }
  0x91   : > { %s4647_s29 = scalar_lea.hbm %s6807_s14, 512 }
  0x92   : > { %p4648_p7 = scmp.ne.s32.totalorder %s6807_s14, %s4647_s29  ;;  %p4654_p3 = scmp.lt.u32.totalorder %s4647_s29, %s6807_s14 }
  0x94   : > { %p4650_p4 = pnand %p4648_p7, %p5808_p8 }
  0x96   : > { %p4651_p1 = pneg %p4650_p4 }
  0x98   : > { %p4656_p9 = pnand %p4654_p3, %p4651_p1 }
  0x9a   : > { %4659 = shalt.err (!%p4656_p9)
}
  0x9b   : > { %s4660_s16 = scalar_lea.vmem %s5802_s2, 512  ;;  %p4668_p13 = scmp.lt.s32.totalorder %s5802_s2, %s5802_s2 }
  0x9c   : > { %p4661_p10 = scmp.ne.s32.totalorder %s5802_s2, %s4660_s16  ;;  %p4669_p0 = scmp.lt.s32.totalorder %s4660_s16, %s4660_s16 }
  0x9e   : > { %p4663_p11 = pnand %p4661_p10, %p5808_p8  ;;  %p4670_p2 = por %p4669_p0, %p4668_p13 }
  0xa0   : > { %p4664_p12 = pneg %p4663_p11 }
  0xa2   : > { %p4671_p5 = pnand %p4670_p2, %p4664_p12 }
  0xa4   : > { %4674 = shalt.err (!%p4671_p5)
}
  0xa5   : > { %4324 = dma.hbm_to_vmem [thread:$0]  (!%p5796_p6), %s6807_s14, 512, %s5802_s2, [#allocation18], %s6729_s1, %s6729_s1, %s6731_s15  }
  0xa6   : > { %s5571_s26 = smov [#allocation20]   ;;  %s5572_s29 = smov [#allocation23]  }
  0xa7   : > { %s855_s23 = sshll.u32 %s5571_s26, 4  ;;  %s880_s16 = sshll.u32 %s5572_s29, 4  ;;  %s856_s23 = int_to_ptr.vmem [resolvable:$true] %s855_s23  ;;  %s881_s16 = int_to_ptr.vmem [resolvable:$true] %s880_s16 }
  0xa8   : > { %s4675_s3 = scalar_lea.hbm %s6804_s24, 256 }
  0xa9   : > { %p4676_p7 = scmp.ne.s32.totalorder %s6804_s24, %s4675_s3  ;;  %p4682_p3 = scmp.lt.u32.totalorder %s4675_s3, %s6804_s24 }
  0xab   : > { %p4678_p4 = pnand %p4676_p7, %p5808_p8 }
  0xad   : > { %p4679_p1 = pneg %p4678_p4 }
  0xaf   : > { %p4684_p9 = pnand %p4682_p3, %p4679_p1 }
  0xb1   : > { %4687 = shalt.err (!%p4684_p9)
}
  0xb2   : > { %s4688_s25 = scalar_lea.vmem %s856_s23, 256  ;;  %p4696_p13 = scmp.lt.s32.totalorder %s856_s23, %s856_s23 }
  0xb3   : > { %p4689_p10 = scmp.ne.s32.totalorder %s856_s23, %s4688_s25  ;;  %p4697_p0 = scmp.lt.s32.totalorder %s4688_s25, %s4688_s25 }
  0xb5   : > { %p4691_p11 = pnand %p4689_p10, %p5808_p8  ;;  %p4698_p2 = por %p4697_p0, %p4696_p13 }
  0xb7   : > { %p4692_p12 = pneg %p4691_p11 }
  0xb9   : > { %p4699_p5 = pnand %p4698_p2, %p4692_p12 }
  0xbb   : > { %4702 = shalt.err (!%p4699_p5)
}
  0xbc   : > { %4330 = dma.hbm_to_vmem [thread:$0]  (!%p5796_p6), %s6804_s24, 256, %s856_s23, [#allocation21], %s6729_s1, %s6729_s1, %s6731_s15  }
  0xbd   : > { %s4703_s3 = scalar_lea.hbm %s6810_s6, 16 }
  0xbe   : > { %p4704_p7 = scmp.ne.s32.totalorder %s6810_s6, %s4703_s3  ;;  %p4710_p3 = scmp.lt.u32.totalorder %s4703_s3, %s6810_s6 }
  0xc0   : > { %p4706_p4 = pnand %p4704_p7, %p5808_p8 }
  0xc2   : > { %p4707_p1 = pneg %p4706_p4 }
  0xc4   : > { %p4712_p9 = pnand %p4710_p3, %p4707_p1 }
  0xc6   : > { %4715 = shalt.err (!%p4712_p9)
}
  0xc7   : > { %s4716_s25 = scalar_lea.vmem %s881_s16, 16  ;;  %s4723_s2 = scalar_lea.vmem %s881_s16, 32 }
  0xc8   : > { %p4717_p10 = scmp.ne.s32.totalorder %s881_s16, %s4716_s25  ;;  %p4724_p13 = scmp.lt.s32.totalorder %s881_s16, %s881_s16 }
  0xc9   : > { %p4725_p0 = scmp.lt.s32.totalorder %s4723_s2, %s4716_s25 }
  0xca   : > { %p4719_p11 = pnand %p4717_p10, %p5808_p8 }
  0xcb   : > { %p4726_p2 = por %p4725_p0, %p4724_p13 }
  0xcc   : > { %p4720_p12 = pneg %p4719_p11 }
  0xce   : > { %p4727_p5 = pnand %p4726_p2, %p4720_p12 }
  0xd0   : > { %4730 = shalt.err (!%p4727_p5)
}
  0xd1   : > { %4336 = dma.hbm_to_vmem [thread:$0]  (!%p5796_p6), %s6810_s6, 16, %s881_s16, [#allocation24]  }
  0xd2   : > { %s5573_s26 = smov [#allocation26]   ;;  %s5574_s29 = smov [#allocation29]  }
  0xd3   : > { %s901_s23 = sshll.u32 %s5573_s26, 4  ;;  %s926_s3 = sshll.u32 %s5574_s29, 4  ;;  %s902_s23 = int_to_ptr.vmem [resolvable:$true] %s901_s23  ;;  %s927_s3 = int_to_ptr.vmem [resolvable:$true] %s926_s3 }
  0xd4   : > { %s4731_s1 = scalar_lea.hbm %s6805_s20, 1024 }
  0xd5   : > { %p4732_p7 = scmp.ne.s32.totalorder %s6805_s20, %s4731_s1  ;;  %p4738_p3 = scmp.lt.u32.totalorder %s4731_s1, %s6805_s20 }
  0xd7   : > { %p4734_p4 = pnand %p4732_p7, %p5808_p8 }
  0xd9   : > { %p4735_p1 = pneg %p4734_p4 }
  0xdb   : > { %p4740_p9 = pnand %p4738_p3, %p4735_p1 }
  0xdd   : > { %4743 = shalt.err (!%p4740_p9)
}
  0xde   : > { %s4744_s25 = scalar_lea.vmem %s902_s23, 1024  ;;  %p4752_p13 = scmp.lt.s32.totalorder %s902_s23, %s902_s23 }
  0xdf   : > { %p4745_p10 = scmp.ne.s32.totalorder %s902_s23, %s4744_s25  ;;  %p4753_p0 = scmp.lt.s32.totalorder %s4744_s25, %s4744_s25 }
  0xe1   : > { %p4747_p11 = pnand %p4745_p10, %p5808_p8  ;;  %p4754_p2 = por %p4753_p0, %p4752_p13 }
  0xe3   : > { %p4748_p12 = pneg %p4747_p11 }
  0xe5   : > { %p4755_p5 = pnand %p4754_p2, %p4748_p12 }
  0xe7   : > { %4758 = shalt.err (!%p4755_p5)
}
  0xe8   : > { %s6819_s16 = smov 128   ;;  %s4759_s1 = scalar_lea.hbm %s6811_s4, 128 }
  0xe9   : > { %4342 = dma.hbm_to_vmem [thread:$0]  (!%p5796_p6), %s6805_s20, 1024, %s902_s23, [#allocation27], %s6819_s16, %s6819_s16, %s6731_s15  }
  0xea   : > { %p4760_p7 = scmp.ne.s32.totalorder %s6811_s4, %s4759_s1  ;;  %p4766_p3 = scmp.lt.u32.totalorder %s4759_s1, %s6811_s4 }
  0xec   : > { %p4762_p4 = pnand %p4760_p7, %p5808_p8 }
  0xee   : > { %p4763_p1 = pneg %p4762_p4 }
  0xf0   : > { %p4768_p9 = pnand %p4766_p3, %p4763_p1 }
  0xf2   : > { %4771 = shalt.err (!%p4768_p9)
}
  0xf3   : > { %s4772_s2 = scalar_lea.vmem %s927_s3, 128  ;;  %p4780_p13 = scmp.lt.s32.totalorder %s927_s3, %s927_s3 }
  0xf4   : > { %p4773_p10 = scmp.ne.s32.totalorder %s927_s3, %s4772_s2  ;;  %p4781_p0 = scmp.lt.s32.totalorder %s4772_s2, %s4772_s2 }
  0xf6   : > { %p4775_p11 = pnand %p4773_p10, %p5808_p8  ;;  %p4782_p2 = por %p4781_p0, %p4780_p13 }
  0xf8   : > { %p4776_p12 = pneg %p4775_p11 }
  0xfa   : > { %p4783_p5 = pnand %p4782_p2, %p4776_p12 }
  0xfc   : > { %4786 = shalt.err (!%p4783_p5)
}
  0xfd   : > { %4348 = dma.hbm_to_vmem [thread:$0]  (!%p5796_p6), %s6811_s4, 128, %s927_s3, [#allocation30]  }
  0xfe   : > { %s5575_s26 = smov [#allocation32]   ;;  %s5576_s29 = smov [#allocation35]  }
  0xff   : > { %s948_s23 = sshll.u32 %s5575_s26, 4  ;;  %s969_s25 = sshll.u32 %s5576_s29, 4  ;;  %s949_s23 = int_to_ptr.vmem [resolvable:$true] %s948_s23  ;;  %s970_s25 = int_to_ptr.vmem [resolvable:$true] %s969_s25 }
 0x100   : > { %s4787_s1 = scalar_lea.hbm %s6808_s12, 128 }
 0x101   : > { %p4788_p7 = scmp.ne.s32.totalorder %s6808_s12, %s4787_s1  ;;  %p4794_p3 = scmp.lt.u32.totalorder %s4787_s1, %s6808_s12 }
 0x103   : > { %p4790_p4 = pnand %p4788_p7, %p5808_p8 }
 0x105   : > { %p4791_p1 = pneg %p4790_p4 }
 0x107   : > { %p4796_p9 = pnand %p4794_p3, %p4791_p1 }
 0x109   : > { %4799 = shalt.err (!%p4796_p9)
}
 0x10a   : > { %s4800_s2 = scalar_lea.vmem %s949_s23, 128  ;;  %p4808_p13 = scmp.lt.s32.totalorder %s949_s23, %s949_s23 }
 0x10b   : > { %p4801_p10 = scmp.ne.s32.totalorder %s949_s23, %s4800_s2  ;;  %p4809_p0 = scmp.lt.s32.totalorder %s4800_s2, %s4800_s2 }
 0x10d   : > { %p4803_p11 = pnand %p4801_p10, %p5808_p8  ;;  %p4810_p2 = por %p4809_p0, %p4808_p13 }
 0x10f   : > { %p4804_p12 = pneg %p4803_p11 }
 0x111   : > { %p4811_p5 = pnand %p4810_p2, %p4804_p12 }
 0x113   : > { %4814 = shalt.err (!%p4811_p5)
}
 0x114   : > { %4354 = dma.hbm_to_vmem [thread:$0]  (!%p5796_p6), %s6808_s12, 128, %s949_s23, [#allocation33]  }
 0x115   : > { %s4815_s3 = scalar_lea.hbm %s6803_s30, 1024 }
 0x116   : > { %p4816_p7 = scmp.ne.s32.totalorder %s6803_s30, %s4815_s3  ;;  %p4822_p3 = scmp.lt.u32.totalorder %s4815_s3, %s6803_s30 }
 0x118   : > { %p4818_p4 = pnand %p4816_p7, %p5808_p8 }
 0x11a   : > { %p4819_p1 = pneg %p4818_p4 }
 0x11c   : > { %p4824_p9 = pnand %p4822_p3, %p4819_p1 }
 0x11e   : > { %4827 = shalt.err (!%p4824_p9)
}
 0x11f   : > { %s4828_s26 = scalar_lea.vmem %s970_s25, 1024  ;;  %p4836_p13 = scmp.lt.s32.totalorder %s970_s25, %s970_s25 }
 0x120   : > { %p4829_p10 = scmp.ne.s32.totalorder %s970_s25, %s4828_s26  ;;  %p4837_p0 = scmp.lt.s32.totalorder %s4828_s26, %s4828_s26 }
 0x122   : > { %p4831_p11 = pnand %p4829_p10, %p5808_p8  ;;  %p4838_p2 = por %p4837_p0, %p4836_p13 }
 0x124   : > { %p4832_p12 = pneg %p4831_p11 }
 0x126   : > { %p4839_p5 = pnand %p4838_p2, %p4832_p12 }
 0x128   : > { %4842 = shalt.err (!%p4839_p5)
}
 0x129   : > { %4360 = dma.hbm_to_vmem [thread:$0]  (!%p5796_p6), %s6803_s30, 1024, %s970_s25, [#allocation36], %s6819_s16, %s6819_s16, %s6731_s15  }
 0x12a   : > { %s5577_s23 = smov [#allocation38]   ;;  %s5578_s1 = smov [#allocation41]  }
 0x12b   : > { %s994_s29 = sshll.u32 %s5577_s23, 4  ;;  %s1016_s2 = sshll.u32 %s5578_s1, 4  ;;  %s995_s29 = int_to_ptr.vmem [resolvable:$true] %s994_s29  ;;  %s1017_s2 = int_to_ptr.vmem [resolvable:$true] %s1016_s2 }
 0x12c   : > { %s4843_s3 = scalar_lea.hbm %s6806_s19, 128 }
 0x12d   : > { %p4844_p7 = scmp.ne.s32.totalorder %s6806_s19, %s4843_s3  ;;  %p4850_p3 = scmp.lt.u32.totalorder %s4843_s3, %s6806_s19 }
 0x12f   : > { %p4846_p4 = pnand %p4844_p7, %p5808_p8 }
 0x131   : > { %p4847_p1 = pneg %p4846_p4 }
 0x133   : > { %p4852_p9 = pnand %p4850_p3, %p4847_p1 }
 0x135   : > { %4855 = shalt.err (!%p4852_p9)
}
 0x136   : > { %s4856_s26 = scalar_lea.vmem %s995_s29, 128  ;;  %p4864_p13 = scmp.lt.s32.totalorder %s995_s29, %s995_s29 }
 0x137   : > { %p4857_p10 = scmp.ne.s32.totalorder %s995_s29, %s4856_s26  ;;  %p4865_p0 = scmp.lt.s32.totalorder %s4856_s26, %s4856_s26 }
 0x139   : > { %p4859_p11 = pnand %p4857_p10, %p5808_p8  ;;  %p4866_p2 = por %p4865_p0, %p4864_p13 }
 0x13b   : > { %p4860_p12 = pneg %p4859_p11 }
 0x13d   : > { %p4867_p5 = pnand %p4866_p2, %p4860_p12 }
 0x13f   : > { %4870 = shalt.err (!%p4867_p5)
}
 0x140   : > { %4366 = dma.hbm_to_vmem [thread:$0]  (!%p5796_p6), %s6806_s19, 128, %s995_s29, [#allocation39]  }
 0x141   : > { %s4871_s25 = scalar_lea.hbm %s6809_s8, 128 }
 0x142   : > { %p4872_p7 = scmp.ne.s32.totalorder %s6809_s8, %s4871_s25  ;;  %p4878_p3 = scmp.lt.u32.totalorder %s4871_s25, %s6809_s8 }
 0x144   : > { %p4874_p4 = pnand %p4872_p7, %p5808_p8 }
 0x146   : > { %p4875_p1 = pneg %p4874_p4 }
 0x148   : > { %p4880_p9 = pnand %p4878_p3, %p4875_p1 }
 0x14a   : > { %4883 = shalt.err (!%p4880_p9)
}
 0x14b   : > { %s4884_s23 = scalar_lea.vmem %s1017_s2, 128  ;;  %p4892_p13 = scmp.lt.s32.totalorder %s1017_s2, %s1017_s2 }
 0x14c   : > { %p4885_p10 = scmp.ne.s32.totalorder %s1017_s2, %s4884_s23  ;;  %p4893_p0 = scmp.lt.s32.totalorder %s4884_s23, %s4884_s23 }
 0x14e   : > { %p4887_p11 = pnand %p4885_p10, %p5808_p8  ;;  %p4894_p2 = por %p4893_p0, %p4892_p13 }
 0x150   : > { %p4888_p12 = pneg %p4887_p11 }
 0x152   : > { %p4895_p5 = pnand %p4894_p2, %p4888_p12 }
 0x154   : > { %4898 = shalt.err (!%p4895_p5)
}
 0x155   : > { %4372 = dma.hbm_to_vmem [thread:$0]  (!%p5796_p6), %s6809_s8, 128, %s1017_s2, [#allocation42]  }
 0x156   : > { %s6736_s29 = sadd.s32 4294967294, %s5535_s11   ;;  %s5955_s1 = sadd.s32 1, %s5535_s11  }
 0x157   : > { %6820 = sst [smem:[#allocation93_spill]] %s5955_s1  ;;  %s103_s3 = sadd.s32 1, %s5531_s10 }
 0x158   : > { %s100_s26 = ssub.s32 %s5535_s11, %s5955_s1  ;;  %p110_p7 = scmp.ne.s32.totalorder %s5531_s10, %s5527_s7 }
 0x159   : > { %p101_p4 = scmp.eq.s32.totalorder %s100_s26, 0  ;;  %p111_p1 = scmp.eq.s32.totalorder %s5535_s11, 0 }
 0x15a   : > { %p116_p3 = scmp.ne.s32.totalorder %s5527_s7, %s5523_s0  ;;  %p706_p9 = scmp.eq.s32.totalorder %s5780_s18, 1 }
 0x15b   : > { %s5967_s25 = scalar_select %p101_p4, %s5531_s10, %s103_s3  }
 0x15c   : > { %p112_p10 = por %p111_p1, %p110_p7  ;;  %p6822_p11 = scmp.eq.s32.totalorder %s5780_s18, 0 }
 0x15d   : > { %6821 = sst [smem:[#allocation94_spill]] %s5967_s25  ;;  %p5975_p13 = por %p706_p9, %p110_p7 }
 0x15e   : > { %p5971_p12 = por %p6822_p11, %p116_p3  ;;  %p712_p0 = scmp.eq.s32.totalorder %s6736_s29, 1 }
 0x15f   : > { %s6824_s23 = scalar_select %p5975_p13, 1, 0 }
 0x160   : > { %s6823_s2 = scalar_select %p5971_p12, 1, 0 }
 0x161   : > { %6825 = sst [smem:[#allocation95_spill]] %s6824_s23  ;;  %p4424_p2 = scmp.lt.s32.totalorder %s5535_s11, 2 }
 0x162   : > { %s5983_s26 = sand.u32 1, %s5531_s10   ;;  %p5985_p5 = por %p712_p0, %p116_p3 }
 0x163   : > { %s6749_s15 = sand.u32 1, %s5535_s11   ;;  %p5990_p4 = pnand %p4424_p2, %p112_p10 }
 0x164   : > { %s6826_s3 = scalar_select %p5985_p5, 1, 0 }
 0x165   : > { %s6828_s4 = scalar_select %p5990_p4, 1, 0 }
 0x166   : > { %6827 = sst [smem:[#allocation96_spill]] %s6826_s3  ;;  %s6750_s6 = sshll.u32 %s5983_s26, 6 }
 0x167   : > { %s6742_s8 = sshll.u32 %s5535_s11, 10  ;;  %s1063_s12 = scalar_lea.vmem [#allocation5], %s6750_s6 }
 0x168   : > { %s5999_s29 = scalar_lea.hbm %s6802_s9, %s6742_s8  ;;  %s1070_s14 = sshll.u32 %s1063_s12, 4  ;;  %s6003_s14 = int_to_ptr.vmem [resolvable:$true] %s1070_s14 }
 0x169   : > { %s6007_s19 = scalar_lea.sflag [#allocation6], %s6749_s15  ;;  %s4899_s20 = scalar_lea.hbm %s5999_s29, 1024 }
 0x16a   : > { %p4900_p7 = scmp.ne.s32.totalorder %s5999_s29, %s4899_s20  ;;  %p6013_p1 = pneg %p5990_p4 }
 0x16b   : > { %s4904_s8 = scalar_lea.hbm %s6802_s9, 2048  ;;  %p4905_p10 = scmp.lt.u32.totalorder %s5999_s29, %s6802_s9 }
 0x16c   : > { %s6829_s24 = scalar_select %p6013_p1, 1, 0 }
 0x16d   : > { %p4902_p3 = pnand %p6013_p1, %p4900_p7  ;;  %p4906_p11 = scmp.lt.u32.totalorder %s4904_s8, %s4899_s20 }
 0x16e   : > { %p4908_p2 = scmp.lt.u32.totalorder %s4899_s20, %s5999_s29 }
 0x16f   : > { %p4903_p9 = pneg %p4902_p3  ;;  %p4907_p0 = por %p4906_p11, %p4905_p10 }
 0x171   : > { %p4909_p5 = por %p4908_p2, %p4907_p0 }
 0x173   : > { %p4910_p13 = pnand %p4909_p5, %p4903_p9 }
 0x175   : > { %4913 = shalt.err (!%p4910_p13)
}
 0x176   : > { %s4914_s12 = scalar_lea.vmem %s6003_s14, 1024  ;;  %s5579_s15 = smov [#allocation5]  }
 0x177   : > { %p4915_p12 = scmp.ne.s32.totalorder %s6003_s14, %s4914_s12  ;;  %s4919_s6 = sshll.u32 %s5579_s15, 4  ;;  %s4920_s6 = int_to_ptr.vmem [resolvable:$false] %s4919_s6 }
 0x178   : > { %s4921_s30 = scalar_lea.vmem %s4920_s6, 2048  ;;  %p4922_p7 = scmp.lt.s32.totalorder %s6003_s14, %s4920_s6 }
 0x179   : > { %p4917_p6 = pnand %p4915_p12, %p6013_p1  ;;  %p4923_p3 = scmp.lt.s32.totalorder %s4921_s30, %s4914_s12 }
 0x17b   : > { %p4918_p8 = pneg %p4917_p6  ;;  %p4924_p10 = por %p4923_p3, %p4922_p7 }
 0x17d   : > { %p4925_p11 = pnand %p4924_p10, %p4918_p8 }
 0x17f   : > { %4928 = shalt.err (!%p4925_p11)
}
 0x180   : > { %s6830_s8 = smov 8   ;;  %s6831_s20 = sld [smem:[#allocation66_spill]] }
 0x181   : > { %4382 = dma.hbm_to_vmem [thread:$0]  (!%p5990_p4), %s5999_s29, 1024, %s6003_s14, %s6007_s19, %s6819_s16, %s6819_s16, %s6830_s8  }
 0x182   : > { %s6832_s30 = sshll.u32 %s5535_s11, 10  ;;  %s6833_s15 = sshll.u32 %s5983_s26, 6 }
 0x183   : > { %s6039_s6 = scalar_lea.hbm %s5632_s21, %s6832_s30  ;;  %s1120_s12 = scalar_lea.vmem [#allocation10], %s6833_s15 }
 0x184   : > { %s1127_s9 = sshll.u32 %s1120_s12, 4  ;;  %s6760_s25 = sshll.u32 %s5983_s26, 3  ;;  %s6043_s9 = int_to_ptr.vmem [resolvable:$true] %s1127_s9 }
 0x185   : > { %s3650_s10 = sshll.u32 %s5535_s11, 7  ;;  %s1102_s14 = scalar_lea.vmem [#allocation8], %s6760_s25 }
 0x186   : > { %s6048_s1 = scalar_lea.hbm %s5622_s13, %s3650_s10  ;;  %s6051_s3 = scalar_lea.hbm %s6831_s20, %s3650_s10 }
 0x187   : > { %s1109_s29 = sshll.u32 %s1102_s14, 4  ;;  %s5580_s30 = smov [#allocation13]   ;;  %s6055_s29 = int_to_ptr.vmem [resolvable:$true] %s1109_s29 }
 0x188   : > { %s6057_s15 = sshll.u32 %s5580_s30, 4  ;;  %s6834_s12 = sand.u32 1, %s5535_s11   ;;  %s798_s15 = int_to_ptr.vmem [resolvable:$true] %s6057_s15 }
 0x189   : > { %s6061_s0 = scalar_lea.sflag [#allocation9], %s6834_s12  ;;  %s4929_s23 = scalar_lea.hbm %s6051_s3, 128 }
 0x18a   : > { %p4930_p6 = scmp.ne.s32.totalorder %s6051_s3, %s4929_s23  ;;  %s4934_s10 = scalar_lea.hbm %s6831_s20, 256 }
 0x18b   : > { %p4935_p13 = scmp.lt.u32.totalorder %s6051_s3, %s6831_s20  ;;  %p4936_p5 = scmp.lt.u32.totalorder %s4934_s10, %s4929_s23 }
 0x18c   : > { %p4932_p8 = pnand %p4930_p6, %p6013_p1  ;;  %p4938_p0 = scmp.lt.u32.totalorder %s4929_s23, %s6051_s3 }
 0x18d   : > { %p4937_p9 = por %p4936_p5, %p4935_p13 }
 0x18e   : > { %p4933_p12 = pneg %p4932_p8 }
 0x18f   : > { %p4939_p2 = por %p4938_p0, %p4937_p9 }
 0x191   : > { %p4940_p7 = pnand %p4939_p2, %p4933_p12 }
 0x193   : > { %4943 = shalt.err (!%p4940_p7)
}
 0x194   : > { %s4944_s14 = scalar_lea.vmem %s6055_s29, 128  ;;  %s5581_s30 = smov [#allocation8]  }
 0x195   : > { %p4945_p3 = scmp.ne.s32.totalorder %s6055_s29, %s4944_s14  ;;  %s4949_s12 = sshll.u32 %s5581_s30, 4  ;;  %s4950_s12 = int_to_ptr.vmem [resolvable:$false] %s4949_s12 }
 0x196   : > { %s4951_s25 = scalar_lea.vmem %s4950_s12, 256  ;;  %p4952_p6 = scmp.lt.s32.totalorder %s6055_s29, %s4950_s12 }
 0x197   : > { %p4947_p10 = pnand %p4945_p3, %p6013_p1  ;;  %p4953_p8 = scmp.lt.s32.totalorder %s4951_s25, %s4944_s14 }
 0x199   : > { %p4948_p11 = pneg %p4947_p10  ;;  %p4954_p13 = por %p4953_p8, %p4952_p6 }
 0x19b   : > { %p4955_p5 = pnand %p4954_p13, %p4948_p11 }
 0x19d   : > { %4958 = shalt.err (!%p4955_p5)
}
 0x19e   : > { %s6835_s23 = sld [smem:[#allocation68_spill]]  ;;  %p6836_p9 = scmp.ne.s32.totalorder %s6818_s17, 0 }
 0x19f   : > { %4388 = dma.hbm_to_vmem [thread:$0]  (!%p5990_p4), %s6051_s3, 128, %s6055_s29, %s6061_s0  }
 0x1a4   : > { %s4959_s10 = scalar_lea.hbm %s6835_s23, 16 }
 0x1a5   : > { %p4960_p12 = scmp.ne.s32.totalorder %s6835_s23, %s4959_s10  ;;  %p4966_p7 = scmp.lt.u32.totalorder %s4959_s10, %s6835_s23 }
 0x1a7   : > { %p4962_p0 = pnand %p4960_p12, %p6836_p9 }
 0x1a9   : > { %p4963_p2 = pneg %p4962_p0 }
 0x1ab   : > { %p4968_p3 = pnand %p4966_p7, %p4963_p2 }
 0x1ad   : > { %4971 = shalt.err (!%p4968_p3)
}
 0x1ae   : > { %s4972_s25 = scalar_lea.vmem %s798_s15, 16  ;;  %s4979_s14 = scalar_lea.vmem %s798_s15, 32 }
 0x1af   : > { %p4973_p10 = scmp.ne.s32.totalorder %s798_s15, %s4972_s25  ;;  %p4980_p8 = scmp.lt.s32.totalorder %s798_s15, %s798_s15 }
 0x1b0   : > { %p4981_p13 = scmp.lt.s32.totalorder %s4979_s14, %s4972_s25 }
 0x1b1   : > { %p4975_p11 = pnand %p4973_p10, %p6836_p9 }
 0x1b2   : > { %p4982_p5 = por %p4981_p13, %p4980_p8 }
 0x1b3   : > { %p4976_p6 = pneg %p4975_p11 }
 0x1b5   : > { %p4983_p4 = pnand %p4982_p5, %p4976_p6 }
 0x1b7   : > { %4986 = shalt.err (!%p4983_p4)
}
 0x1b8   : > { %p6837_p1 = scmp.ne.s32.totalorder %s6817_s28, 0  ;;  %s6838_s3 = sld [smem:[#allocation70_spill]] }
 0x1b9   : > { %s5582_s29 = smov [#allocation16]   ;;  %s5583_s12 = smov [#allocation19]  }
 0x1ba   : > { %4315 = dma.hbm_to_vmem [thread:$0]  (!%p6837_p1), %s6835_s23, 16, %s798_s15, [#allocation12]  }
 0x1bb   : > { %s821_s30 = sshll.u32 %s5582_s29, 4  ;;  %s845_s10 = sshll.u32 %s5583_s12, 4  ;;  %s822_s30 = int_to_ptr.vmem [resolvable:$true] %s821_s30  ;;  %s846_s10 = int_to_ptr.vmem [resolvable:$true] %s845_s10 }
 0x1be   : > { %s4987_s20 = scalar_lea.hbm %s6838_s3, 16 }
 0x1bf   : > { %p4988_p12 = scmp.ne.s32.totalorder %s6838_s3, %s4987_s20  ;;  %p4994_p7 = scmp.lt.u32.totalorder %s4987_s20, %s6838_s3 }
 0x1c1   : > { %p4990_p0 = pnand %p4988_p12, %p6836_p9 }
 0x1c3   : > { %p4991_p2 = pneg %p4990_p0 }
 0x1c5   : > { %p4996_p4 = pnand %p4994_p7, %p4991_p2 }
 0x1c7   : > { %4999 = shalt.err (!%p4996_p4)
}
 0x1c8   : > { %s5000_s25 = scalar_lea.vmem %s822_s30, 16  ;;  %s5007_s15 = scalar_lea.vmem %s822_s30, 32 }
 0x1c9   : > { %p5001_p3 = scmp.ne.s32.totalorder %s822_s30, %s5000_s25  ;;  %p5008_p6 = scmp.lt.s32.totalorder %s822_s30, %s822_s30 }
 0x1ca   : > { %p5009_p8 = scmp.lt.s32.totalorder %s5007_s15, %s5000_s25 }
 0x1cb   : > { %p5003_p10 = pnand %p5001_p3, %p6836_p9 }
 0x1cc   : > { %p5010_p13 = por %p5009_p8, %p5008_p6 }
 0x1cd   : > { %p5004_p11 = pneg %p5003_p10 }
 0x1cf   : > { %p5011_p5 = pnand %p5010_p13, %p5004_p11 }
 0x1d1   : > { %5014 = shalt.err (!%p5011_p5)
}
 0x1d2   : > { %s6839_s14 = sld [smem:[#allocation72_spill]] }
 0x1d3   : > { %4321 = dma.hbm_to_vmem [thread:$0]  (!%p6837_p1), %s6838_s3, 16, %s822_s30, [#allocation15]  }
 0x1d8   : > { %s5015_s20 = scalar_lea.hbm %s6839_s14, 16 }
 0x1d9   : > { %p5016_p12 = scmp.ne.s32.totalorder %s6839_s14, %s5015_s20  ;;  %p5022_p7 = scmp.lt.u32.totalorder %s5015_s20, %s6839_s14 }
 0x1db   : > { %p5018_p0 = pnand %p5016_p12, %p6836_p9 }
 0x1dd   : > { %p5019_p2 = pneg %p5018_p0 }
 0x1df   : > { %p5024_p4 = pnand %p5022_p7, %p5019_p2 }
 0x1e1   : > { %5027 = shalt.err (!%p5024_p4)
}
 0x1e2   : > { %s5028_s29 = scalar_lea.vmem %s846_s10, 16  ;;  %s5035_s12 = scalar_lea.vmem %s846_s10, 32 }
 0x1e3   : > { %p5029_p3 = scmp.ne.s32.totalorder %s846_s10, %s5028_s29  ;;  %p5036_p6 = scmp.lt.s32.totalorder %s846_s10, %s846_s10 }
 0x1e4   : > { %p5037_p8 = scmp.lt.s32.totalorder %s5035_s12, %s5028_s29 }
 0x1e5   : > { %p5031_p10 = pnand %p5029_p3, %p6836_p9 }
 0x1e6   : > { %p5038_p13 = por %p5037_p8, %p5036_p6 }
 0x1e7   : > { %p5032_p11 = pneg %p5031_p10 }
 0x1e9   : > { %p5039_p5 = pnand %p5038_p13, %p5032_p11 }
 0x1eb   : > { %5042 = shalt.err (!%p5039_p5)
}
 0x1ec   : > { %s6840_s30 = sld [smem:[#allocation74_spill]]  ;;  %s5584_s25 = smov [#allocation22]  }
 0x1ed   : > { %4327 = dma.hbm_to_vmem [thread:$0]  (!%p6837_p1), %s6839_s14, 16, %s846_s10, [#allocation18]  }
 0x1ee   : > { %s869_s15 = sshll.u32 %s5584_s25, 4  ;;  %s5585_s20 = smov [#allocation25]   ;;  %s870_s15 = int_to_ptr.vmem [resolvable:$true] %s869_s15 }
 0x1ef   : > { %s891_s3 = sshll.u32 %s5585_s20, 4  ;;  %s892_s3 = int_to_ptr.vmem [resolvable:$true] %s891_s3 }
 0x1f2   : > { %s5043_s23 = scalar_lea.hbm %s6840_s30, 16 }
 0x1f3   : > { %p5044_p12 = scmp.ne.s32.totalorder %s6840_s30, %s5043_s23  ;;  %p5050_p7 = scmp.lt.u32.totalorder %s5043_s23, %s6840_s30 }
 0x1f5   : > { %p5046_p0 = pnand %p5044_p12, %p6836_p9 }
 0x1f7   : > { %p5047_p2 = pneg %p5046_p0 }
 0x1f9   : > { %p5052_p4 = pnand %p5050_p7, %p5047_p2 }
 0x1fb   : > { %5055 = shalt.err (!%p5052_p4)
}
 0x1fc   : > { %s5056_s29 = scalar_lea.vmem %s870_s15, 16  ;;  %s5063_s10 = scalar_lea.vmem %s870_s15, 32 }
 0x1fd   : > { %p5057_p3 = scmp.ne.s32.totalorder %s870_s15, %s5056_s29  ;;  %p5064_p6 = scmp.lt.s32.totalorder %s870_s15, %s870_s15 }
 0x1fe   : > { %p5065_p8 = scmp.lt.s32.totalorder %s5063_s10, %s5056_s29 }
 0x1ff   : > { %p5059_p10 = pnand %p5057_p3, %p6836_p9 }
 0x200   : > { %p5066_p13 = por %p5065_p8, %p5064_p6 }
 0x201   : > { %p5060_p11 = pneg %p5059_p10 }
 0x203   : > { %p5067_p5 = pnand %p5066_p13, %p5060_p11 }
 0x205   : > { %5070 = shalt.err (!%p5067_p5)
}
 0x206   : > { %s6841_s12 = sld [smem:[#allocation76_spill]] }
 0x207   : > { %4333 = dma.hbm_to_vmem [thread:$0]  (!%p6837_p1), %s6840_s30, 16, %s870_s15, [#allocation21]  }
 0x20c   : > { %s5071_s23 = scalar_lea.hbm %s6841_s12, 16 }
 0x20d   : > { %p5072_p12 = scmp.ne.s32.totalorder %s6841_s12, %s5071_s23  ;;  %p5078_p7 = scmp.lt.u32.totalorder %s5071_s23, %s6841_s12 }
 0x20f   : > { %p5074_p0 = pnand %p5072_p12, %p6836_p9 }
 0x211   : > { %p5075_p2 = pneg %p5074_p0 }
 0x213   : > { %p5080_p4 = pnand %p5078_p7, %p5075_p2 }
 0x215   : > { %5083 = shalt.err (!%p5080_p4)
}
 0x216   : > { %s5084_s25 = scalar_lea.vmem %s892_s3, 16  ;;  %s5091_s20 = scalar_lea.vmem %s892_s3, 32 }
 0x217   : > { %p5085_p3 = scmp.ne.s32.totalorder %s892_s3, %s5084_s25  ;;  %p5092_p6 = scmp.lt.s32.totalorder %s892_s3, %s892_s3 }
 0x218   : > { %p5093_p8 = scmp.lt.s32.totalorder %s5091_s20, %s5084_s25 }
 0x219   : > { %p5087_p10 = pnand %p5085_p3, %p6836_p9 }
 0x21a   : > { %p5094_p13 = por %p5093_p8, %p5092_p6 }
 0x21b   : > { %p5088_p11 = pneg %p5087_p10 }
 0x21d   : > { %p5095_p5 = pnand %p5094_p13, %p5088_p11 }
 0x21f   : > { %5098 = shalt.err (!%p5095_p5)
}
 0x220   : > { %s6842_s15 = sld [smem:[#allocation78_spill]]  ;;  %s5586_s29 = smov [#allocation28]  }
 0x221   : > { %4339 = dma.hbm_to_vmem [thread:$0]  (!%p6837_p1), %s6841_s12, 16, %s892_s3, [#allocation24]  }
 0x222   : > { %s915_s10 = sshll.u32 %s5586_s29, 4  ;;  %s5587_s23 = smov [#allocation31]   ;;  %s916_s10 = int_to_ptr.vmem [resolvable:$true] %s915_s10 }
 0x223   : > { %s937_s14 = sshll.u32 %s5587_s23, 4  ;;  %s938_s14 = int_to_ptr.vmem [resolvable:$true] %s937_s14 }
 0x226   : > { %s5099_s30 = scalar_lea.hbm %s6842_s15, 16 }
 0x227   : > { %p5100_p12 = scmp.ne.s32.totalorder %s6842_s15, %s5099_s30  ;;  %p5106_p7 = scmp.lt.u32.totalorder %s5099_s30, %s6842_s15 }
 0x229   : > { %p5102_p0 = pnand %p5100_p12, %p6836_p9 }
 0x22b   : > { %p5103_p2 = pneg %p5102_p0 }
 0x22d   : > { %p5108_p4 = pnand %p5106_p7, %p5103_p2 }
 0x22f   : > { %5111 = shalt.err (!%p5108_p4)
}
 0x230   : > { %s5112_s25 = scalar_lea.vmem %s916_s10, 16  ;;  %s5119_s3 = scalar_lea.vmem %s916_s10, 32 }
 0x231   : > { %p5113_p3 = scmp.ne.s32.totalorder %s916_s10, %s5112_s25  ;;  %p5120_p6 = scmp.lt.s32.totalorder %s916_s10, %s916_s10 }
 0x232   : > { %p5121_p8 = scmp.lt.s32.totalorder %s5119_s3, %s5112_s25 }
 0x233   : > { %p5115_p10 = pnand %p5113_p3, %p6836_p9 }
 0x234   : > { %p5122_p13 = por %p5121_p8, %p5120_p6 }
 0x235   : > { %p5116_p11 = pneg %p5115_p10 }
 0x237   : > { %p5123_p5 = pnand %p5122_p13, %p5116_p11 }
 0x239   : > { %5126 = shalt.err (!%p5123_p5)
}
 0x23a   : > { %s6843_s20 = sld [smem:[#allocation80_spill]] }
 0x23b   : > { %4345 = dma.hbm_to_vmem [thread:$0]  (!%p6837_p1), %s6842_s15, 16, %s916_s10, [#allocation27]  }
 0x240   : > { %s5127_s30 = scalar_lea.hbm %s6843_s20, 16 }
 0x241   : > { %p5128_p12 = scmp.ne.s32.totalorder %s6843_s20, %s5127_s30  ;;  %p5134_p7 = scmp.lt.u32.totalorder %s5127_s30, %s6843_s20 }
 0x243   : > { %p5130_p0 = pnand %p5128_p12, %p6836_p9 }
 0x245   : > { %p5131_p2 = pneg %p5130_p0 }
 0x247   : > { %p5136_p4 = pnand %p5134_p7, %p5131_p2 }
 0x249   : > { %5139 = shalt.err (!%p5136_p4)
}
 0x24a   : > { %s5140_s29 = scalar_lea.vmem %s938_s14, 16  ;;  %s5147_s23 = scalar_lea.vmem %s938_s14, 32 }
 0x24b   : > { %p5141_p3 = scmp.ne.s32.totalorder %s938_s14, %s5140_s29  ;;  %p5148_p6 = scmp.lt.s32.totalorder %s938_s14, %s938_s14 }
 0x24c   : > { %p5149_p8 = scmp.lt.s32.totalorder %s5147_s23, %s5140_s29 }
 0x24d   : > { %p5143_p10 = pnand %p5141_p3, %p6836_p9 }
 0x24e   : > { %p5150_p13 = por %p5149_p8, %p5148_p6 }
 0x24f   : > { %p5144_p11 = pneg %p5143_p10 }
 0x251   : > { %p5151_p5 = pnand %p5150_p13, %p5144_p11 }
 0x253   : > { %5154 = shalt.err (!%p5151_p5)
}
 0x254   : > { %s6844_s10 = sld [smem:[#allocation82_spill]]  ;;  %s5588_s3 = smov [#allocation34]  }
 0x255   : > { %4351 = dma.hbm_to_vmem [thread:$0]  (!%p6837_p1), %s6843_s20, 16, %s938_s14, [#allocation30]  }
 0x256   : > { %s959_s30 = sshll.u32 %s5588_s3, 4  ;;  %s5589_s12 = smov [#allocation37]   ;;  %s960_s30 = int_to_ptr.vmem [resolvable:$true] %s959_s30 }
 0x257   : > { %s983_s15 = sshll.u32 %s5589_s12, 4  ;;  %s984_s15 = int_to_ptr.vmem [resolvable:$true] %s983_s15 }
 0x25a   : > { %s6845_s25 = smov %s6844_s10  ;;  %s5155_s27 = scalar_lea.hbm %s6844_s10, 16 }
 0x25b   : > { %p5156_p12 = scmp.ne.s32.totalorder %s6845_s25, %s5155_s27  ;;  %p5162_p7 = scmp.lt.u32.totalorder %s5155_s27, %s6845_s25 }
 0x25d   : > { %p5158_p0 = pnand %p5156_p12, %p6836_p9 }
 0x25f   : > { %p5159_p2 = pneg %p5158_p0 }
 0x261   : > { %p5164_p4 = pnand %p5162_p7, %p5159_p2 }
 0x263   : > { %5167 = shalt.err (!%p5164_p4)
}
 0x264   : > { %s5168_s29 = scalar_lea.vmem %s960_s30, 16  ;;  %s5175_s14 = scalar_lea.vmem %s960_s30, 32 }
 0x265   : > { %p5169_p3 = scmp.ne.s32.totalorder %s960_s30, %s5168_s29  ;;  %p5176_p6 = scmp.lt.s32.totalorder %s960_s30, %s960_s30 }
 0x266   : > { %p5177_p8 = scmp.lt.s32.totalorder %s5175_s14, %s5168_s29 }
 0x267   : > { %p5171_p10 = pnand %p5169_p3, %p6836_p9 }
 0x268   : > { %p5178_p13 = por %p5177_p8, %p5176_p6 }
 0x269   : > { %p5172_p11 = pneg %p5171_p10 }
 0x26b   : > { %p5179_p5 = pnand %p5178_p13, %p5172_p11 }
 0x26d   : > { %5182 = shalt.err (!%p5179_p5)
}
 0x26e   : > { %s6846_s12 = sld [smem:[#allocation84_spill]] }
 0x26f   : > { %4357 = dma.hbm_to_vmem [thread:$0]  (!%p6837_p1), %s6845_s25, 16, %s960_s30, [#allocation33]  }
 0x274   : > { %s5183_s27 = scalar_lea.hbm %s6846_s12, 16 }
 0x275   : > { %p5184_p12 = scmp.ne.s32.totalorder %s6846_s12, %s5183_s27  ;;  %p5190_p7 = scmp.lt.u32.totalorder %s5183_s27, %s6846_s12 }
 0x277   : > { %p5186_p0 = pnand %p5184_p12, %p6836_p9 }
 0x279   : > { %p5187_p2 = pneg %p5186_p0 }
 0x27b   : > { %p5192_p4 = pnand %p5190_p7, %p5187_p2 }
 0x27d   : > { %5195 = shalt.err (!%p5192_p4)
}
 0x27e   : > { %s5196_s23 = scalar_lea.vmem %s984_s15, 16  ;;  %s5203_s10 = scalar_lea.vmem %s984_s15, 32 }
 0x27f   : > { %p5197_p3 = scmp.ne.s32.totalorder %s984_s15, %s5196_s23  ;;  %p5204_p6 = scmp.lt.s32.totalorder %s984_s15, %s984_s15 }
 0x280   : > { %p5205_p8 = scmp.lt.s32.totalorder %s5203_s10, %s5196_s23 }
 0x281   : > { %p5199_p10 = pnand %p5197_p3, %p6836_p9 }
 0x282   : > { %p5206_p13 = por %p5205_p8, %p5204_p6 }
 0x283   : > { %p5200_p11 = pneg %p5199_p10 }
 0x285   : > { %p5207_p5 = pnand %p5206_p13, %p5200_p11 }
 0x287   : > { %5210 = shalt.err (!%p5207_p5)
}
 0x288   : > { %s6847_s3 = sld [smem:[#allocation86_spill]]  ;;  %s5590_s30 = smov [#allocation40]  }
 0x289   : > { %4363 = dma.hbm_to_vmem [thread:$0]  (!%p6837_p1), %s6846_s12, 16, %s984_s15, [#allocation36]  }
 0x28a   : > { %s1005_s29 = sshll.u32 %s5590_s30, 4  ;;  %s5591_s14 = smov [#allocation43]   ;;  %s1006_s29 = int_to_ptr.vmem [resolvable:$true] %s1005_s29 }
 0x28b   : > { %s1027_s27 = sshll.u32 %s5591_s14, 4  ;;  %s1028_s27 = int_to_ptr.vmem [resolvable:$true] %s1027_s27 }
 0x28e   : > { %s5211_s20 = scalar_lea.hbm %s6847_s3, 16 }
 0x28f   : > { %p5212_p12 = scmp.ne.s32.totalorder %s6847_s3, %s5211_s20  ;;  %p5218_p7 = scmp.lt.u32.totalorder %s5211_s20, %s6847_s3 }
 0x291   : > { %p5214_p0 = pnand %p5212_p12, %p6836_p9 }
 0x293   : > { %p5215_p2 = pneg %p5214_p0 }
 0x295   : > { %p5220_p4 = pnand %p5218_p7, %p5215_p2 }
 0x297   : > { %5223 = shalt.err (!%p5220_p4)
}
 0x298   : > { %s5224_s23 = scalar_lea.vmem %s1006_s29, 16  ;;  %s5231_s15 = scalar_lea.vmem %s1006_s29, 32 }
 0x299   : > { %p5225_p3 = scmp.ne.s32.totalorder %s1006_s29, %s5224_s23  ;;  %p5232_p6 = scmp.lt.s32.totalorder %s1006_s29, %s1006_s29 }
 0x29a   : > { %p5233_p8 = scmp.lt.s32.totalorder %s5231_s15, %s5224_s23 }
 0x29b   : > { %p5227_p10 = pnand %p5225_p3, %p6836_p9 }
 0x29c   : > { %p5234_p13 = por %p5233_p8, %p5232_p6 }
 0x29d   : > { %p5228_p11 = pneg %p5227_p10 }
 0x29f   : > { %p5235_p5 = pnand %p5234_p13, %p5228_p11 }
 0x2a1   : > { %5238 = shalt.err (!%p5235_p5)
}
 0x2a2   : > { %4369 = dma.hbm_to_vmem [thread:$0]  (!%p6837_p1), %s6847_s3, 16, %s1006_s29, [#allocation39]  }
 0x2a3   : > { %s5239_s20 = scalar_lea.hbm %s5742_s5, 16 }
 0x2a4   : > { %p5240_p12 = scmp.ne.s32.totalorder %s5742_s5, %s5239_s20  ;;  %p5246_p7 = scmp.lt.u32.totalorder %s5239_s20, %s5742_s5 }
 0x2a6   : > { %p5242_p0 = pnand %p5240_p12, %p6836_p9 }
 0x2a8   : > { %p5243_p2 = pneg %p5242_p0 }
 0x2aa   : > { %p5248_p4 = pnand %p5246_p7, %p5243_p2 }
 0x2ac   : > { %5251 = shalt.err (!%p5248_p4)
}
 0x2ad   : > { %s5252_s10 = scalar_lea.vmem %s1028_s27, 16  ;;  %s5259_s30 = scalar_lea.vmem %s1028_s27, 32 }
 0x2ae   : > { %p5253_p3 = scmp.ne.s32.totalorder %s1028_s27, %s5252_s10  ;;  %p5260_p6 = scmp.lt.s32.totalorder %s1028_s27, %s1028_s27 }
 0x2af   : > { %p5261_p8 = scmp.lt.s32.totalorder %s5259_s30, %s5252_s10 }
 0x2b0   : > { %p5255_p10 = pnand %p5253_p3, %p6836_p9 }
 0x2b1   : > { %p5262_p13 = por %p5261_p8, %p5260_p6 }
 0x2b2   : > { %p5256_p11 = pneg %p5255_p10 }
 0x2b4   : > { %p5263_p5 = pnand %p5262_p13, %p5256_p11 }
 0x2b6   : > { %5266 = shalt.err (!%p5263_p5)
}
 0x2b7   : > { %s6848_s29 = sld [smem:[#allocation64_spill]]  ;;  %s3643_s17 = sshll.u32 %s5983_s26, 5 }
 0x2b8   : > { %4375 = dma.hbm_to_vmem [thread:$0]  (!%p6837_p1), %s5742_s5, 16, %s1028_s27, [#allocation42]  }
 0x2b9   : > { %s3757_s14 = sshll.u32 %s5535_s11, 9  ;;  %s1042_s15 = scalar_lea.vmem [#allocation2], %s3643_s17 }
 0x2ba   : > { %s1049_s28 = sshll.u32 %s1042_s15, 4  ;;  %s6849_s20 = sshll.u32 %s5983_s26, 3  ;;  %s6199_s28 = int_to_ptr.vmem [resolvable:$true] %s1049_s28 }
 0x2bb   : > { %s1084_s10 = scalar_lea.vmem [#allocation7], %s6849_s20  ;;  %s1039_s3 = scalar_lea.sflag [#allocation3], %s5983_s26 }
 0x2bc   : > { %s1091_s30 = sshll.u32 %s1084_s10, 4  ;;  %p6850_p9 = scmp.ne.s32.totalorder %s6829_s24, 0  ;;  %s6201_s30 = int_to_ptr.vmem [resolvable:$true] %s1091_s30 }
 0x2bd   : > { %s6195_s23 = scalar_lea.hbm %s6848_s29, %s3757_s14  ;;  %s5272_s14 = scalar_lea.hbm %s6848_s29, 1024 }
 0x2be   : > { %s5267_s27 = scalar_lea.hbm %s6195_s23, 512  ;;  %p5273_p2 = scmp.lt.u32.totalorder %s6195_s23, %s6848_s29 }
 0x2bf   : > { %p5268_p1 = scmp.ne.s32.totalorder %s6195_s23, %s5267_s27  ;;  %p5274_p7 = scmp.lt.u32.totalorder %s5272_s14, %s5267_s27 }
 0x2c0   : > { %p5276_p3 = scmp.lt.u32.totalorder %s5267_s27, %s6195_s23 }
 0x2c1   : > { %p5270_p12 = pnand %p5268_p1, %p6850_p9  ;;  %p5275_p4 = por %p5274_p7, %p5273_p2 }
 0x2c3   : > { %p5271_p0 = pneg %p5270_p12  ;;  %p5277_p10 = por %p5276_p3, %p5275_p4 }
 0x2c5   : > { %p5278_p11 = pnand %p5277_p10, %p5271_p0 }
 0x2c7   : > { %5281 = shalt.err (!%p5278_p11)
}
 0x2c8   : > { %s5282_s17 = scalar_lea.vmem %s6199_s28, 512  ;;  %s5592_s15 = smov [#allocation2]  }
 0x2c9   : > { %p5283_p6 = scmp.ne.s32.totalorder %s6199_s28, %s5282_s17  ;;  %s5287_s20 = sshll.u32 %s5592_s15, 4  ;;  %s5288_s20 = int_to_ptr.vmem [resolvable:$false] %s5287_s20 }
 0x2ca   : > { %s5289_s10 = scalar_lea.vmem %s5288_s20, 1024  ;;  %p5290_p5 = scmp.lt.s32.totalorder %s6199_s28, %s5288_s20 }
 0x2cb   : > { %p5285_p8 = pnand %p5283_p6, %p6850_p9  ;;  %p5291_p1 = scmp.lt.s32.totalorder %s5289_s10, %s5282_s17 }
 0x2cd   : > { %p5286_p13 = pneg %p5285_p8  ;;  %p5292_p12 = por %p5291_p1, %p5290_p5 }
 0x2cf   : > { %p5293_p2 = pnand %p5292_p12, %p5286_p13 }
 0x2d1   : > { %5296 = shalt.err (!%p5293_p2)
}
 0x2d2   : > { %p6851_p0 = scmp.ne.s32.totalorder %s6828_s4, 0  ;;  %s5297_s27 = scalar_lea.hbm %s6048_s1, 128 }
 0x2d3   : > { %p5298_p7 = scmp.ne.s32.totalorder %s6048_s1, %s5297_s27  ;;  %s5302_s14 = scalar_lea.hbm %s5622_s13, 256 }
 0x2d4   : > { %4379 = dma.hbm_to_vmem [thread:$0]  (!%p6851_p0), %s6195_s23, 512, %s6199_s28, %s1039_s3, %s6819_s16, %s6819_s16, %s6830_s8  }
 0x2d5   : > { %p5300_p4 = pnand %p5298_p7, %p6850_p9  ;;  %p5303_p10 = scmp.lt.u32.totalorder %s6048_s1, %s5622_s13 }
 0x2d6   : > { %p5304_p11 = scmp.lt.u32.totalorder %s5302_s14, %s5297_s27  ;;  %p5306_p8 = scmp.lt.u32.totalorder %s5297_s27, %s6048_s1 }
 0x2d7   : > { %p5301_p3 = pneg %p5300_p4 }
 0x2d8   : > { %p5305_p6 = por %p5304_p11, %p5303_p10 }
 0x2da   : > { %p5307_p13 = por %p5306_p8, %p5305_p6 }
 0x2dc   : > { %p5308_p5 = pnand %p5307_p13, %p5301_p3 }
 0x2de   : > { %5311 = shalt.err (!%p5308_p5)
}
 0x2df   : > { %s5312_s26 = scalar_lea.vmem %s6201_s30, 128  ;;  %s5593_s3 = smov [#allocation7]  }
 0x2e0   : > { %p5313_p1 = scmp.ne.s32.totalorder %s6201_s30, %s5312_s26  ;;  %s5317_s23 = sshll.u32 %s5593_s3, 4  ;;  %s5318_s23 = int_to_ptr.vmem [resolvable:$false] %s5317_s23 }
 0x2e1   : > { %s5319_s28 = scalar_lea.vmem %s5318_s23, 256  ;;  %p5320_p7 = scmp.lt.s32.totalorder %s6201_s30, %s5318_s23 }
 0x2e2   : > { %p5315_p12 = pnand %p5313_p1, %p6850_p9  ;;  %p5321_p4 = scmp.lt.s32.totalorder %s5319_s28, %s5312_s26 }
 0x2e4   : > { %p5316_p2 = pneg %p5315_p12  ;;  %p5322_p10 = por %p5321_p4, %p5320_p7 }
 0x2e6   : > { %p5323_p11 = pnand %p5322_p10, %p5316_p2 }
 0x2e8   : > { %5326 = shalt.err (!%p5323_p11)
}
 0x2e9   : > { %4385 = dma.hbm_to_vmem [thread:$0]  (!%p6851_p0), %s6048_s1, 128, %s6201_s30, %s6007_s19  }
 0x2ea   : > { %s5327_s17 = scalar_lea.hbm %s6039_s6, 1024  ;;  %s5332_s15 = scalar_lea.hbm %s5632_s21, 2048 }
 0x2eb   : > { %p5328_p3 = scmp.ne.s32.totalorder %s6039_s6, %s5327_s17  ;;  %p5333_p13 = scmp.lt.u32.totalorder %s6039_s6, %s5632_s21 }
 0x2ec   : > { %p5334_p5 = scmp.lt.u32.totalorder %s5332_s15, %s5327_s17  ;;  %p5336_p12 = scmp.lt.u32.totalorder %s5327_s17, %s6039_s6 }
 0x2ed   : > { %p5330_p6 = pnand %p5328_p3, %p6850_p9 }
 0x2ee   : > { %p5335_p1 = por %p5334_p5, %p5333_p13 }
 0x2ef   : > { %p5331_p8 = pneg %p5330_p6 }
 0x2f0   : > { %p5337_p2 = por %p5336_p12, %p5335_p1 }
 0x2f2   : > { %p5338_p7 = pnand %p5337_p2, %p5331_p8 }
 0x2f4   : > { %5341 = shalt.err (!%p5338_p7)
}
 0x2f5   : > { %s5342_s20 = scalar_lea.vmem %s6043_s9, 1024  ;;  %s5594_s19 = smov [#allocation10]  }
 0x2f6   : > { %p5343_p4 = scmp.ne.s32.totalorder %s6043_s9, %s5342_s20  ;;  %s5347_s1 = sshll.u32 %s5594_s19, 4  ;;  %s5348_s1 = int_to_ptr.vmem [resolvable:$false] %s5347_s1 }
 0x2f7   : > { %s5349_s30 = scalar_lea.vmem %s5348_s1, 2048  ;;  %p5350_p3 = scmp.lt.s32.totalorder %s6043_s9, %s5348_s1 }
 0x2f8   : > { %p5345_p10 = pnand %p5343_p4, %p6850_p9  ;;  %p5351_p6 = scmp.lt.s32.totalorder %s5349_s30, %s5342_s20 }
 0x2fa   : > { %p5346_p11 = pneg %p5345_p10  ;;  %p5352_p13 = por %p5351_p6, %p5350_p3 }
 0x2fc   : > { %p5353_p5 = pnand %p5352_p13, %p5346_p11 }
 0x2fe   : > { %5356 = shalt.err (!%p5353_p5)
}
 0x2ff   : > { %4391 = dma.hbm_to_vmem [thread:$0]  (!%p6851_p0), %s6039_s6, 1024, %s6043_s9, %s6061_s0, %s6819_s16, %s6819_s16, %s6830_s8  }
 0x300   : > { %p6852_p9 = scmp.ne.s32.totalorder %s6816_s22, 0 }
 0x301   : > { %s6268_s24 = sand.u32 (!%p6852_p9), 1, %s5527_s7   ;;  %p6853_p8 = scmp.ne.s32.totalorder (!%p6852_p9), %s6823_s2, 0 }
 0x302   : > { %1139 = sbr.rel (%p6852_p9) target bundleno = 3646 (0xe3e), region = 128  ;;  %s3657_s10 = sshll.u32 (!%p6852_p9), %s6268_s24, 5 }
 0x303   : > { %s1142_s27 = scalar_lea.sflag (!%p6852_p9), [#allocation3], %s6268_s24  ;;  %s6272_s14 = scalar_lea.vmem (!%p6852_p9), [#allocation2], %s3657_s10 }
 0x309   : > { %5458 = dma.done.wait (%p6853_p8), %s1142_s27, 512  }
 0x30a   : > { %5460 = vsyncadd (%p6853_p8), %s1142_s27, 4294966784  ;;  %s6279_s9 = sand.u32 1, %s5780_s18   ;;  %s6282_s4 = sshll.u32 %s6268_s24, 6 }
 0x30b   : > { %s1151_s0 = scalar_lea.sflag [#allocation6], %s6279_s9  ;;  %s6286_s22 = scalar_lea.vmem [#allocation5], %s6282_s4 }
 0x30c   : > { %5462 = dma.done.wait (%p6853_p8), %s1151_s0, 1152  }
 0x30d   : > { %5464 = vsyncadd (%p6853_p8), %s1151_s0, 4294966144  ;;  %s6293_s16 = sshll.u32 %s6268_s24, 3  ;;  %s1169_s6 = scalar_lea.sflag [#allocation9], %s6279_s9 }
 0x30e   : > { %s1163_s8 = scalar_lea.vmem [#allocation7], %s6293_s16  ;;  %s1172_s26 = scalar_lea.vmem [#allocation8], %s6293_s16 }
 0x30f   : > { %5466 = dma.done.wait (%p6853_p8), %s1169_s6, 1152  }
 0x310   : > { %5468 = vsyncadd (%p6853_p8), %s1169_s6, 4294966144  ;;  %s6303_s3 = scalar_lea.vmem [#allocation10], %s6282_s4  ;;  %p6854_p0 = scmp.eq.s32.totalorder %s5780_s18, 0 }
 0x312   : > { %5470 = dma.done.wait (%p6854_p0), [#allocation12], 528   ;;  %p6855_p1 = pmov %p6854_p0 }
 0x313   : > { %p6856_p12 = pmov %p6854_p0 }
 0x314   : > { %5472 = vsyncadd (%p6855_p1), [#allocation12], 4294966768 }
 0x315   : > { %5474 = dma.done.wait (%p6856_p12), [#allocation15], 528   ;;  %p6857_p2 = pmov %p6854_p0 }
 0x316   : > { %p6858_p7 = pmov %p6854_p0 }
 0x317   : > { %5476 = vsyncadd (%p6857_p2), [#allocation15], 4294966768 }
 0x318   : > { %5478 = dma.done.wait (%p6858_p7), [#allocation18], 528   ;;  %p6859_p4 = pmov %p6854_p0 }
 0x319   : > { %p6860_p10 = pmov %p6854_p0 }
 0x31a   : > { %5480 = vsyncadd (%p6859_p4), [#allocation18], 4294966768 }
 0x31b   : > { %5482 = dma.done.wait (%p6860_p10), [#allocation21], 272   ;;  %p6861_p11 = pmov %p6854_p0 }
 0x31c   : > { %p6862_p3 = pmov %p6854_p0 }
 0x31d   : > { %5484 = vsyncadd (%p6861_p11), [#allocation21], 4294967024 }
 0x31e   : > { %5486 = dma.done.wait (%p6862_p3), [#allocation24], 32   ;;  %p6863_p6 = pmov %p6854_p0 }
 0x31f   : > { %p6864_p13 = pmov %p6854_p0 }
 0x320   : > { %5488 = vsyncadd (%p6863_p6), [#allocation24], 4294967264 }
 0x321   : > { %5490 = dma.done.wait (%p6864_p13), [#allocation27], 1040   ;;  %p6865_p5 = pmov %p6854_p0 }
 0x322   : > { %p6866_p9 = pmov %p6854_p0 }
 0x323   : > { %5492 = vsyncadd (%p6865_p5), [#allocation27], 4294966256 }
 0x324   : > { %5494 = dma.done.wait (%p6866_p9), [#allocation30], 144   ;;  %p6867_p8 = pmov %p6854_p0 }
 0x326   : > { %5496 = vsyncadd (%p6867_p8), [#allocation30], 4294967152 }
 0x327   : > { %5498 = dma.done.wait (%p6854_p0), [#allocation33], 144   ;;  %p6868_p1 = pmov %p6854_p0 }
 0x328   : > { %p6869_p12 = pmov %p6854_p0 }
 0x329   : > { %5500 = vsyncadd (%p6868_p1), [#allocation33], 4294967152 }
 0x32a   : > { %5502 = dma.done.wait (%p6869_p12), [#allocation36], 1040   ;;  %p6870_p2 = pmov %p6854_p0 }
 0x32b   : > { %p6871_p7 = pmov %p6854_p0 }
 0x32c   : > { %5504 = vsyncadd (%p6870_p2), [#allocation36], 4294966256 }
 0x32d   : > { %5506 = dma.done.wait (%p6871_p7), [#allocation39], 144   ;;  %p6872_p4 = pmov %p6854_p0 }
 0x32e   : > { %p6873_p10 = pmov %p6854_p0 }
 0x32f   : > { %5508 = vsyncadd (%p6872_p4), [#allocation39], 4294967152 }
 0x330   : > { %5510 = dma.done.wait (%p6873_p10), [#allocation42], 144   ;;  %p6874_p11 = pmov %p6854_p0 }
 0x331   : > { %v5595_v0 = vmov 0.0|0.0   ;;  %vm5596_vm0 = vmmov 0   ;;  %v5597_v1 = vmov 0.0   ;;  %v1374_v2 = vld [vmem:[%s6272_s14] sm:$0xff]  ;;  %v1375_v3 = vld [vmem:[%s6272_s14 + $0x8] sm:$0xff]  ;;  %v1456_v7 = vld [vmem:[#allocation11 + $0x10] sm:$0xff] }
 0x332   : > { %5512 = vsyncadd (%p6874_p11), [#allocation42], 4294967152  ;;  %4087 = vmatprep.subr.bf16.mxu0 %v5595_v0  ;;  %3875 = vmatprep.mubr.msk.f32.mxu0 %vm5596_vm0, %v5597_v1  ;;  %v1454_v4 = vld [vmem:[#allocation11] sm:$0xff]  ;;  %v1455_v5 = vld [vmem:[#allocation11 + $0x8] sm:$0xff]  ;;  %vm1426_vm1 = vcmask 261120   ;;  %s6370_s2 = scalar_lea.vmem [#allocation45], %s6282_s4 }
 0x333   : > { %1378 = vxpose.xlu0.b32.start [1/4] (short) (narrow) %v1374_v2, 64  ;;  %v4088_v6 = vpack.c.bf16 %v1455_v5, %v1454_v4  ;;  %v1457_v8 = vld [vmem:[#allocation11 + $0x18] sm:$0xff]  ;;  %v1678_v9 = vld [vmem:[#allocation17] sm:$0xff]  ;;  %v1679_v10 = vld [vmem:[#allocation17 + $0x8] sm:$0xff]  ;;  %s5598_s23 = smov 120   ;;  %vm1818_vm2 = vcmask 64512  }
 0x334   : > { %v1435_v11 = vld [vmem:[%s1163_s8] sm:$0xff]  ;;  %v4091_v12 = vpack.c.bf16 %v1457_v8, %v1456_v7  ;;  %v1436_v13 = vld [vmem:[%s1172_s26] sm:$0xff]  ;;  %v4101_v17 = vpack.c.bf16 %v1679_v10, %v1678_v9  ;;  %vm6481_vm3 = vmpackc.low %vm1818_vm2, %vm1818_vm2  ;;  %vm1917_vm4 = vcmask 523264   ;;  %s6877_s28 = sld [smem:[#allocation89_spill]]  ;;  %vm3002_vm6 = vcmask 1040384   ;;  %s6878_s17 = sld [smem:[#allocation95_spill]] }
 0x335   : > { %4089 = vmatpush3.bf16.msra.mxu0 %v4088_v6  ;;  %v1538_v14 = vld [vmem:[#allocation14] sm:$0xff]  ;;  %v1539_v15 = vld [vmem:[#allocation14 + $0x8] sm:$0xff]  ;;  %v1680_v19 = vld [vmem:[#allocation17 + $0x10] sm:$0xff]  ;;  %v1437_v23 = vadd.f32 %v1436_v13, %v1435_v11  ;;  %vm3004_vm8 = vcmask 1041408   ;;  %s1359_s15 = scalar_lea.vmem [#allocation44], %s6293_s16  ;;  %s3760_s20 = sshll.u32 %s5780_s18, 10 }
 0x336   : > { %v1376_v16 = vld [vmem:[%s6272_s14 + $0x10] sm:$0xff]  ;;  %4090 = vmatprep.subr.bf16.mxu0 %v5595_v0  ;;  %v4093_v18 = vpack.c.bf16 %v1539_v15, %v1538_v14  ;;  %v1681_v20 = vld [vmem:[#allocation17 + $0x18] sm:$0xff]  ;;  %v1411_v31 = vld [vmem:[%s6286_s22 + $0x8] sm:$0xff]  ;;  %s3147_s1 = sshll.u32 %s6370_s2, 4  ;;  %s3116_s30 = scalar_lea.sflag [#allocation46], %s6279_s9  ;;  %s6620_s1 = int_to_ptr.vmem [resolvable:$true] %s3147_s1 }
 0x337   : > { %1379 = vxpose.xlu0.b32.cont [2/4] (short) (narrow) %v1375_v3, 64  ;;  %v1540_v21 = vld [vmem:[#allocation14 + $0x10] sm:$0xff]  ;;  %v1541_v22 = vld [vmem:[#allocation14 + $0x18] sm:$0xff]  ;;  %v4105_v25 = vpack.c.bf16 %v1681_v20, %v1680_v19  ;;  %v1439_v34 = vld [vmem:[%s6303_s3 + $0x8] sm:$0xff]  ;;  %s5357_s10 = scalar_lea.vmem %s6620_s1, 1024  ;;  %s5599_s27 = smov [#allocation45]  }
 0x338   : > { %4094 = vmatprep.subr.bf16.mxu1 %v4093_v18  ;;  %v4097_v24 = vpack.c.bf16 %v1541_v22, %v1540_v21  ;;  %v1377_v26 = vld [vmem:[%s6272_s14 + $0x18] sm:$0xff]  ;;  %v1410_v27 = vld [vmem:[%s6286_s22] sm:$0xff]  ;;  %v1412_v36 = vld [vmem:[%s6286_s22 + $0x10] sm:$0xff]  ;;  %p5358_p3 = scmp.ne.s32.totalorder %s6620_s1, %s5357_s10  ;;  %s5361_s14 = sshll.u32 %s5599_s27, 4  ;;  %s5362_s14 = int_to_ptr.vmem [resolvable:$false] %s5361_s14 }
 0x339   : > { %4092 = vmatpush3.bf16.msra.mxu0 %v4091_v12  ;;  %4096 = vmatpush3.bf16.msra.mxu1 %v4093_v18  ;;  %v1438_v29 = vld [vmem:[%s6303_s3] sm:$0xff]  ;;  %v1440_v40 = vld [vmem:[%s6303_s3 + $0x10] sm:$0xff]  ;;  %v1413_v42 = vld [vmem:[%s6286_s22 + $0x18] sm:$0xff]  ;;  %s5363_s4 = scalar_lea.vmem %s5362_s14, 2048  ;;  %p5364_p9 = scmp.lt.s32.totalorder %s6620_s1, %s5362_s14 }
 0x33a   : > { %4102 = vmatprep.subr.bf16.mxu0 %v4101_v17  ;;  %4098 = vmatprep.subr.bf16.mxu1 %v4097_v24  ;;  %v1441_v45 = vld [vmem:[%s6303_s3 + $0x18] sm:$0xff]  ;;  %v1414_v47 = vld [vmem:[%s6286_s22 + $0x20] sm:$0xff]  ;;  %v1415_v53 = vld [vmem:[%s6286_s22 + $0x28] sm:$0xff]  ;;  %s6617_s19 = scalar_lea.hbm %s6877_s28, %s3760_s20  ;;  %p6879_p6 = scmp.ne.s32.totalorder %s6878_s17, 0 }
 0x33b   : > { %1380 = vxpose.xlu0.b32.cont [3/4] (short) (narrow) %v1376_v16, 64  ;;  %v1442_v51 = vld [vmem:[%s6303_s3 + $0x20] sm:$0xff]  ;;  %v1443_v56 = vld [vmem:[%s6303_s3 + $0x28] sm:$0xff]  ;;  %v1416_v58 = vld [vmem:[%s6286_s22 + $0x30] sm:$0xff]  ;;  %p5365_p8 = scmp.lt.s32.totalorder %s5363_s4, %s5357_s10 }
 0x33c   : > { %3876 = vmatmul.mubr.msk.f32.vlgmr.msra.gmra.mrb[0].mxu0 %vm1426_vm1, %v1437_v23  ;;  %v1444_v62 = vld [vmem:[%s6303_s3 + $0x30] sm:$0xff]  ;;  %v1417_v2 = vld [vmem:[%s6286_s22 + $0x38] sm:$0xff]  ;;  %v3687_v9 = vld [vmem:[#allocation13] ss:$0 sm:$0xff]  ;;  %p5359_p13 = pnand %p5358_p3, %p6879_p6 }
 0x33d   : > { %4104 = vmatpush3.bf16.msra.mxu0 %v4101_v17  ;;  %4100 = vmatpush3.bf16.msra.mxu1 %v4097_v24  ;;  %v1445_v5 = vld [vmem:[%s6303_s3 + $0x38] sm:$0xff]  ;;  %v3698_v13 = vld [vmem:[#allocation19] ss:$0 sm:$0xff]  ;;  %v3689_v15 = vld [vmem:[#allocation16] ss:$0 sm:$0xff]  ;;  %p5366_p0 = por %p5365_p8, %p5364_p9 }
 0x33e   : > { %4106 = vmatprep.subr.bf16.mxu0 %v4105_v25  ;;  %4109 = vmatprep.subr.bf16.mxu1 %v5595_v0  ;;  %vm4191_vm5 = vmpackc.low %vm1426_vm1, %vm1426_vm1  ;;  %p5360_p5 = pneg %p5359_p13 }
 0x33f   : > { %1381 = vxpose.xlu0.b32.end [4/4] (short) (narrow) %v1377_v26, 64 }
 0x340   : > { %p5367_p1 = pnand %p5366_p0, %p5360_p5 }
 0x341   : > { %4108 = vmatpush3.bf16.msra.mxu0 %v4105_v25 }
 0x342   : > { %4137 = vmatprep.subr.bf16.mxu0 %v5595_v0 }
 0x3b3   : > { %v1394_v28 = vpop.trf.xlu0 }
 0x3b4   : > { %v6366_v30 = vmul.f32 %v1410_v27, %v1394_v28 }
 0x3b6   : > { %1427 = vst.msk [vmem:[%s6370_s2] sm:$0xff] %vm1426_vm1, %v6366_v30  ;;  %3906 = vmatprep.mubr.msk.f32.mxu0 %vm1426_vm1, %v6366_v30  ;;  %v1446_v32 = vadd.f32 %v1438_v29, %v6366_v30 }
 0x3b7   : > { %v1395_v33 = vpop.trf.xlu0 }
 0x3b8   : > { %v6379_v35 = vmul.f32 %v1411_v31, %v1395_v33  ;;  %3886 = vmatprep.mubr.msk.f32.mxu1 %vm1426_vm1, %v1446_v32 }
 0x3ba   : > { %1428 = vst.msk [vmem:[%s6370_s2 + $0x8] sm:$0xff] %vm1426_vm1, %v6379_v35  ;;  %v4190_v37 = vpack.c.bf16 %v6379_v35, %v6366_v30  ;;  %3907 = vmatmul.mubr.msk.f32.vlgmr.msra.gmra.mrb[2].mxu0 %vm1426_vm1, %v6379_v35  ;;  %v1447_v38 = vadd.f32 %v1439_v34, %v6379_v35  ;;  %v2922_v30 = vld [vmem:[#allocation41] sm:$0xff] }
 0x3bb   : > { %v1396_v39 = vpop.trf.xlu0 }
 0x3bc   : > { %v6392_v41 = vmul.f32 %v1412_v36, %v1396_v39  ;;  %3887 = vmatmul.mubr.msk.f32.vlgmr.msra.gmra.mrb[0].mxu1 %vm1426_vm1, %v1447_v38 }
 0x3be   : > { %1429 = vst.msk [vmem:[%s6370_s2 + $0x10] sm:$0xff] %vm1426_vm1, %v6392_v41  ;;  %3909 = vmatprep.mubr.msk.f32.mxu0 %vm1426_vm1, %v6392_v41  ;;  %v1448_v43 = vadd.f32 %v1440_v40, %v6392_v41 }
 0x3bf   : > { %v1397_v44 = vpop.trf.xlu0 }
 0x3c0   : > { %v6403_v46 = vmul.f32 %v1413_v42, %v1397_v44  ;;  %3889 = vmatprep.mubr.msk.f32.mxu1 %vm1426_vm1, %v1448_v43 }
 0x3c2   : > { %1430 = vst.msk [vmem:[%s6370_s2 + $0x18] sm:$0xff] %vm1426_vm1, %v6403_v46  ;;  %v4194_v48 = vpack.c.bf16 %v6403_v46, %v6392_v41  ;;  %3910 = vmatmul.mubr.msk.f32.gmra.mrb[4].mxu0 %vm1426_vm1, %v6403_v46  ;;  %v1449_v49 = vadd.f32 %v1441_v45, %v6403_v46  ;;  %v3101_v46 = vlaneseq }
 0x3c3   : > { %v1398_v50 = vpop.trf.xlu0 }
 0x3c4   : > { %v6416_v52 = vmul.f32 %v1414_v47, %v1398_v50  ;;  %3890 = vmatmul.mubr.msk.f32.gmra.mrb[2].mxu1 %vm1426_vm1, %v1449_v49 }
 0x3c6   : > { %1431 = vst.msk [vmem:[%s6370_s2 + $0x20] sm:$0xff] %vm1426_vm1, %v6416_v52  ;;  %3912 = vmatprep.mubr.msk.f32.mxu0 %vm1426_vm1, %v6416_v52  ;;  %v1450_v54 = vadd.f32 %v1442_v51, %v6416_v52 }
 0x3c7   : > { %v1399_v55 = vpop.trf.xlu0 }
 0x3c8   : > { %v6427_v57 = vmul.f32 %v1415_v53, %v1399_v55  ;;  %3892 = vmatprep.mubr.msk.f32.mxu1 %vm1426_vm1, %v1450_v54 }
 0x3ca   : > { %1432 = vst.msk [vmem:[%s6370_s2 + $0x28] sm:$0xff] %vm1426_vm1, %v6427_v57  ;;  %v4198_v59 = vpack.c.bf16 %v6427_v57, %v6416_v52  ;;  %3913 = vmatmul.mubr.msk.f32.gmra.mrb[6].mxu0 %vm1426_vm1, %v6427_v57  ;;  %v1451_v60 = vadd.f32 %v1443_v56, %v6427_v57 }
 0x3cb   : > { %v1400_v61 = vpop.trf.xlu0 }
 0x3cc   : > { %v6440_v63 = vmul.f32 %v1416_v58, %v1400_v61  ;;  %3893 = vmatmul.mubr.msk.f32.gmra.mrb[4].mxu1 %vm1426_vm1, %v1451_v60 }
 0x3ce   : > { %1433 = vst.msk [vmem:[%s6370_s2 + $0x30] sm:$0xff] %vm1426_vm1, %v6440_v63  ;;  %3915 = vmatprep.mubr.msk.f32.mxu0 %vm1426_vm1, %v6440_v63  ;;  %v1452_v3 = vadd.f32 %v1444_v62, %v6440_v63 }
 0x3cf   : > { %v1401_v4 = vpop.trf.xlu0 }
 0x3d0   : > { %v6451_v6 = vmul.f32 %v1417_v2, %v1401_v4  ;;  %3895 = vmatprep.mubr.msk.f32.mxu1 %vm1426_vm1, %v1452_v3 }
 0x3d2   : > { %1434 = vst.msk [vmem:[%s6370_s2 + $0x38] sm:$0xff] %vm1426_vm1, %v6451_v6  ;;  %v4202_v7 = vpack.c.bf16 %v6451_v6, %v6440_v63  ;;  %3916 = vmatmul.mubr.msk.f32.gmra.mrb[8].mxu0 %vm1426_vm1, %v6451_v6  ;;  %v1453_v8 = vadd.f32 %v1445_v5, %v6451_v6 }
 0x3d3   : > { %3972 = vmatprep.mubr.msk.f32.mxu0 %vm5596_vm0, %v5597_v1 }
 0x3d4   : > { %3896 = vmatmul.mubr.msk.f32.gmra.mrb[6].mxu1 %vm1426_vm1, %v1453_v8 }
 0x3d5   : > { %3934 = vmatprep.mubr.msk.f32.mxu1 %vm5596_vm0, %v5597_v1 }
 0x40f   : > { %v1534_v10 = vpop.f32.mrb[0].mxu0 }
 0x410   : > { %v6467_v11 = vadd.f32 %v3687_v9, %v1534_v10  ;;  %v3877_v12 = vpop.f32.mrb[1].mxu0 }
 0x412   : > { %2003 = vrot.lane.b32.xlu0 %v6467_v11, %s5598_s23 }
 0x48d   : > { %v3908_v14 = vpop.f32.mrb[2].mxu0 }
 0x48e   : > { %v6471_v16 = vadd.f32 %v3908_v14, %v3698_v13  ;;  %v1779_v17 = vpop.f32.mrb[3].mxu0 }
 0x48f   : > { %v6473_v18 = vadd.f32 %v3698_v13, %v1779_v17  ;;  %v3888_v19 = vpop.f32.mrb[0].mxu1 }
 0x490   : > { %v1645_v20 = vadd.f32 %v3888_v19, %v3689_v15  ;;  %v1639_v21 = vpop.f32.mrb[1].mxu1 }
 0x491   : > { %v4559_v22 = vpack.i.bf16 %v6471_v16, %v6473_v18  ;;  %v4126_v23 = vpack.c.bf16 %v6471_v16, %v6473_v18  ;;  %v1640_v24 = vadd.f32 %v3689_v15, %v1639_v21 }
 0x493   : > { %v4110_v26 = vpack.c.bf16 %v1645_v20, %v1640_v24  ;;  %v4539_v27 = vpack.i.bf16 %v1645_v20, %v1640_v24 }
 0x495   : > { %4540 = vrot.lane.b32.xlu1 %v4539_v27, %s5598_s23  ;;  %v3911_v28 = vpop.f32.mrb[4].mxu0  ;;  %4112 = vmatpush3.bf16.xpose.msk.msra.mxu1 %vm6481_vm3, %v4110_v26 }
 0x496   : > { %v1795_v29 = vadd.f32 %v3911_v28, %v3698_v13  ;;  %v1789_v31 = vpop.f32.mrb[5].mxu0  ;;  %4113 = vmatprep.subr.bf16.mxu1 %v5595_v0 }
 0x497   : > { %v1790_v32 = vadd.f32 %v3698_v13, %v1789_v31  ;;  %v3891_v33 = vpop.f32.mrb[2].mxu1 }
 0x498   : > { %v1655_v34 = vadd.f32 %v3891_v33, %v3689_v15  ;;  %v1649_v36 = vpop.f32.mrb[3].mxu1 }
 0x499   : > { %v4564_v38 = vpack.i.bf16 %v1795_v29, %v1790_v32  ;;  %v4129_v39 = vpack.c.bf16 %v1795_v29, %v1790_v32  ;;  %v1650_v40 = vadd.f32 %v3689_v15, %v1649_v36  ;;  %v2004_v36 = vpop.permute.xlu0 %2003 }
 0x49b   : > { %v4544_v42 = vpack.i.bf16 %v1655_v34, %v1650_v40  ;;  %v4114_v43 = vpack.c.bf16 %v1655_v34, %v1650_v40  ;;  %4565 = vrot.lane.b32.xlu0 %v4564_v38, %s5598_s23 }
 0x49d   : > { %4545 = vrot.lane.b32.xlu1 %v4544_v42, %s5598_s23  ;;  %v3914_v44 = vpop.f32.mrb[6].mxu0  ;;  %4116 = vmatpush3.bf16.xpose.msk.msra.mxu1 %vm6481_vm3, %v4114_v43 }
 0x49e   : > { %v1805_v45 = vadd.f32 %v3914_v44, %v3698_v13  ;;  %v1799_v47 = vpop.f32.mrb[7].mxu0  ;;  %4117 = vmatprep.subr.bf16.mxu1 %v5595_v0 }
 0x49f   : > { %v1800_v49 = vadd.f32 %v3698_v13, %v1799_v47  ;;  %v3894_v50 = vpop.f32.mrb[4].mxu1 }
 0x4a0   : > { %v1665_v51 = vadd.f32 %v3894_v50, %v3689_v15  ;;  %v1659_v53 = vpop.f32.mrb[5].mxu1 }
 0x4a1   : > { %v4569_v54 = vpack.i.bf16 %v1805_v45, %v1800_v49  ;;  %v4132_v55 = vpack.c.bf16 %v1805_v45, %v1800_v49  ;;  %v1660_v56 = vadd.f32 %v3689_v15, %v1659_v53 }
 0x4a3   : > { %v4549_v58 = vpack.i.bf16 %v1665_v51, %v1660_v56  ;;  %v4118_v60 = vpack.c.bf16 %v1665_v51, %v1660_v56  ;;  %4570 = vrot.lane.b32.xlu0 %v4569_v54, %s5598_s23 }
 0x4a5   : > { %4550 = vrot.lane.b32.xlu1 %v4549_v58, %s5598_s23  ;;  %v3917_v61 = vpop.f32.mrb[8].mxu0  ;;  %4120 = vmatpush3.bf16.xpose.msk.msra.mxu1 %vm6481_vm3, %v4118_v60 }
 0x4a6   : > { %v1815_v62 = vadd.f32 %v3917_v61, %v3698_v13  ;;  %v1809_v2 = vpop.f32.mrb[9].mxu0  ;;  %4121 = vmatprep.subr.bf16.mxu1 %v5595_v0 }
 0x4a7   : > { %v1810_v3 = vadd.f32 %v3698_v13, %v1809_v2  ;;  %v3897_v4 = vpop.f32.mrb[6].mxu1 }
 0x4a8   : > { %v1675_v5 = vadd.f32 %v3897_v4, %v3689_v15  ;;  %v1669_v8 = vpop.f32.mrb[7].mxu1 }
 0x4a9   : > { %v4574_v9 = vpack.i.bf16 %v1815_v62, %v1810_v3  ;;  %v4135_v10 = vpack.c.bf16 %v1815_v62, %v1810_v3  ;;  %v1670_v12 = vadd.f32 %v3689_v15, %v1669_v8 }
 0x4ab   : > { %v4554_v14 = vpack.i.bf16 %v1675_v5, %v1670_v12  ;;  %v4122_v17 = vpack.c.bf16 %v1675_v5, %v1670_v12  ;;  %4575 = vrot.lane.b32.xlu0 %v4574_v9, %s5598_s23 }
 0x4ad   : > { %4555 = vrot.lane.b32.xlu1 %v4554_v14, %s5598_s23  ;;  %4124 = vmatpush3.bf16.xpose.msk.msra.mxu1 %vm6481_vm3, %v4122_v17 }
 0x4ae   : > { %4125 = vmatprep.subr.bf16.mxu1 %v5595_v0 }
 0x4b4   : > { %3935 = vmatmul.mubr.msk.f32.vlgmr.msra.gmra.mrb[8].mxu1 %vm1818_vm2, %v6467_v11 }
 0x4b5   : > { %4127 = vmatpush3.bf16.msra.mxu1 %v4126_v23  ;;  %3953 = vmatprep.mubr.msk.f32.mxu1 %vm5596_vm0, %v5597_v1 }
 0x4b6   : > { %4128 = vmatprep.subr.bf16.mxu1 %v5595_v0 }
 0x4b9   : > { %4130 = vmatpush3.bf16.msra.mxu1 %v4129_v39 }
 0x4ba   : > { %4131 = vmatprep.subr.bf16.mxu1 %v5595_v0 }
 0x4bd   : > { %4133 = vmatpush3.bf16.msra.mxu1 %v4132_v55 }
 0x4be   : > { %4134 = vmatprep.subr.bf16.mxu1 %v5595_v0 }
 0x4c1   : > { %4136 = vmatpush3.bf16.msra.mxu1 %v4135_v10 }
 0x4c2   : > { %4153 = vmatprep.subr.bf16.mxu1 %v5595_v0 }
 0x507   : > { %v4541_v13 = vpop.permute.xlu1 %4540 }
 0x508   : > { %v4543_v15 = vunpack.i.h.bf16 %v4541_v13  ;;  %v4542_v19 = vunpack.i.l.bf16 %v4541_v13 }
 0x50a   : > { %v4138_v20 = vpack.c.bf16 %v4543_v15, %v4542_v19 }
 0x50c   : > { %4140 = vmatpush3.bf16.xpose.msk.msra.mxu0 %vm6481_vm3, %v4138_v20 }
 0x50d   : > { %4141 = vmatprep.subr.bf16.mxu0 %v5595_v0  ;;  %v4566_v4 = vpop.permute.xlu0 %4565 }
 0x50e   : > { %v4568_v10 = vunpack.i.h.bf16 %v4566_v4  ;;  %v4567_v12 = vunpack.i.l.bf16 %v4566_v4 }
 0x50f   : > { %v4546_v11 = vpop.permute.xlu1 %4545 }
 0x510   : > { %v4548_v21 = vunpack.i.h.bf16 %v4546_v11  ;;  %v4547_v23 = vunpack.i.l.bf16 %v4546_v11  ;;  %v4157_v16 = vpack.c.bf16 %v4568_v10, %v4567_v12 }
 0x512   : > { %v4142_v24 = vpack.c.bf16 %v4548_v21, %v4547_v23 }
 0x514   : > { %4144 = vmatpush3.bf16.xpose.msk.msra.mxu0 %vm6481_vm3, %v4142_v24  ;;  %v2226_v24 = vld [vmem:[#allocation20 + $0x8] sm:$0xff] }
 0x515   : > { %4145 = vmatprep.subr.bf16.mxu0 %v5595_v0  ;;  %v4571_v17 = vpop.permute.xlu0 %4570 }
 0x516   : > { %v4573_v18 = vunpack.i.h.bf16 %v4571_v17 }
 0x517   : > { %v4551_v26 = vpop.permute.xlu1 %4550 }
 0x518   : > { %v4553_v27 = vunpack.i.h.bf16 %v4551_v26  ;;  %v4552_v28 = vunpack.i.l.bf16 %v4551_v26 }
 0x51a   : > { %v4146_v29 = vpack.c.bf16 %v4553_v27, %v4552_v28  ;;  %v2002_v28 = vld [vmem:[#allocation20] sm:$0xff] }
 0x51c   : > { %4148 = vmatpush3.bf16.xpose.msk.msra.mxu0 %vm6481_vm3, %v4146_v29 }
 0x51d   : > { %4149 = vmatprep.subr.bf16.mxu0 %v5595_v0  ;;  %v4576_v13 = vpop.permute.xlu0 %4575 }
 0x51e   : > { %v4578_v19 = vunpack.i.h.bf16 %v4576_v13  ;;  %v4577_v20 = vunpack.i.l.bf16 %v4576_v13  ;;  %v2541_v13 = vld [vmem:[#allocation31] sm:$0x1] }
 0x51f   : > { %v4556_v31 = vpop.permute.xlu1 %4555 }
 0x520   : > { %v4558_v32 = vunpack.i.h.bf16 %v4556_v31  ;;  %v4557_v33 = vunpack.i.l.bf16 %v4556_v31  ;;  %v4163_v21 = vpack.c.bf16 %v4578_v19, %v4577_v20  ;;  %v2693_v19 = vld [vmem:[#allocation35 + $0x8] sm:$0xff] }
 0x522   : > { %v4150_v34 = vpack.c.bf16 %v4558_v32, %v4557_v33  ;;  %v2382_v32 = vld [vmem:[#allocation26] sm:$0xff]  ;;  %v2383_v33 = vld [vmem:[#allocation26 + $0x8] sm:$0xff] }
 0x524   : > { %4152 = vmatpush3.bf16.xpose.msk.msra.mxu0 %vm6481_vm3, %v4150_v34  ;;  %v4172_v34 = vpack.c.bf16 %v2383_v33, %v2382_v32  ;;  %v2691_v32 = vld [vmem:[#allocation25] sm:$0x1] }
 0x525   : > { %4165 = vmatprep.subr.bf16.mxu0 %v5595_v0  ;;  %v2846_v33 = vld [vmem:[#allocation38] sm:$0xff] }
 0x52b   : > { %3973 = vmatmul.mubr.msk.f32.vlgmr.msra.gmra.mrb[10].mxu0 %vm1818_vm2, %v2004_v36  ;;  %v2386_v36 = vld [vmem:[#allocation26 + $0x20] sm:$0xff] }
 0x52c   : > { %4012 = vmatprep.mubr.msk.f32.mxu0 %vm5596_vm0, %v5597_v1 }
 0x587   : > { %v1912_v38 = vpop.f32.mrb[8].mxu1 }
 0x588   : > { %v1916_v39 = vmul.f32 0.35355338, %v1912_v38  ;;  %v3936_v40 = vpop.f32.mrb[9].mxu1  ;;  %v2387_v38 = vld [vmem:[#allocation26 + $0x28] sm:$0xff] }
 0x589   : > { %v2384_v40 = vld [vmem:[#allocation26 + $0x10] sm:$0xff] }
 0x58a   : > { %v1918_v42 = vsel %vm1917_vm4, %v1916_v39, -inf }
 0x58b   : > { %1919 = vmax.xlane.f32.xlu1 %v1918_v42  ;;  %v2385_v42 = vld [vmem:[#allocation26 + $0x18] sm:$0xff] }
 0x5fe   : > { %v2105_v43 = vpop.f32.mrb[10].mxu0 }
 0x5ff   : > { %v2109_v44 = vmul.f32 0.35355338, %v2105_v43  ;;  %v3974_v45 = vpop.f32.mrb[11].mxu0  ;;  %v4175_v43 = vpack.c.bf16 %v2385_v42, %v2384_v40 }
 0x600   : > { %v2389_v45 = vld [vmem:[#allocation26 + $0x38] sm:$0xff] }
 0x601   : > { %v2110_v25 = vsel %vm1917_vm4, %v2109_v44, -inf }
 0x602   : > { %2111 = vmax.xlane.f32.xlu1 %v2110_v25 }
 0x618   : > { %v1920_v47 = vpop.xlane.xlu1 %1919 }
 0x619   : > { %v1921_v49 = vsub.f32 %v1916_v39, %v1920_v47  ;;  %v4166_v39 = vpack.c.bf16 %v2387_v38, %v2386_v36  ;;  %v2381_v47 = vld [vmem:[#allocation23] sm:$0x1] }
 0x61b   : > { %v1922_v50 = vmul.f32 1.442695, %v1921_v49  ;;  %4167 = vmatpush3.bf16.msra.mxu0 %v4166_v39  ;;  %v2843_v39 = vld [vmem:[#allocation37] sm:$0x1] }
 0x61c   : > { %4168 = vmatprep.subr.bf16.mxu0 %v5595_v0 }
 0x61d   : > { %4579 = vpow2.f32 %v1922_v50 }
 0x627   : > { %v4580_v51 = vpop.eup %4579 }
 0x628   : > { %v1924_v53 = vsel %vm1917_vm4, %v4580_v51, 0.0 }
 0x629   : > { %1925 = vadd.xlane.f32.xlu1 %v1924_v53  ;;  %v3729_v53 = vld [vmem:[#allocation22] ss:$0 sm:$0xff] }
 0x68f   : > { %v2112_v54 = vpop.xlane.xlu1 %2111 }
 0x690   : > { %v2113_v55 = vsub.f32 %v2109_v44, %v2112_v54  ;;  %v2388_v44 = vld [vmem:[#allocation26 + $0x30] sm:$0xff] }
 0x691   : > { %v4169_v25 = vpack.c.bf16 %v2389_v45, %v2388_v44 }
 0x692   : > { %v2114_v56 = vmul.f32 1.442695, %v2113_v55 }
 0x693   : > { %4170 = vmatpush3.bf16.msra.mxu0 %v4169_v25  ;;  %v2923_v25 = vld [vmem:[#allocation43] sm:$0x1] }
 0x694   : > { %4581 = vpow2.f32 %v2114_v56  ;;  %4026 = vmatprep.subr.mxu0 %v5597_v1 }
 0x69e   : > { %v4582_v58 = vpop.eup %4581 }
 0x69f   : > { %v2116_v60 = vsel %vm1917_vm4, %v4582_v58, 0.0 }
 0x6a0   : > { %2117 = vadd.xlane.f32.xlu1 %v2116_v60 }
 0x6b1   : > { %4560 = vrot.lane.b32.xlu1 %v4559_v22, %s5598_s23  ;;  %v4572_v22 = vunpack.i.l.bf16 %v4571_v17  ;;  %v2698_v17 = vld [vmem:[#allocation35 + $0x30] sm:$0xff] }
 0x6b3   : > { %v4160_v15 = vpack.c.bf16 %v4573_v18, %v4572_v22  ;;  %v2616_v22 = vld [vmem:[#allocation32] sm:$0xff] }
 0x6b6   : > { %v1926_v61 = vpop.xlane.xlu1 %1925 }
 0x6b7   : > { %4583 = vrcp.f32 %v1926_v61 }
 0x6c1   : > { %v4584_v62 = vpop.eup %4583 }
 0x6c2   : > { %v1928_v2 = vmul.f32 %v4584_v62, %v4580_v51  ;;  %v2540_v62 = vld [vmem:[#allocation29] sm:$0xff] }
 0x6c4   : > { %3954 = vmatmul.mubr.msk.f32.vlgmr.msra.gmra.mrb[10].mxu1 %vm1917_vm4, %v1928_v2 }
 0x6c5   : > { %3991 = vmatprep.mubr.msk.f32.mxu1 %vm5596_vm0, %v5597_v1 }
 0x72d   : > { %v2118_v3 = vpop.xlane.xlu1 %2117 }
 0x72e   : > { %4585 = vrcp.f32 %v2118_v3  ;;  %v2537_v3 = vld [vmem:[#allocation28] sm:$0x1] }
 0x731   : > { %v4561_v5 = vpop.permute.xlu1 %4560 }
 0x732   : > { %v4563_v8 = vunpack.i.h.bf16 %v4561_v5  ;;  %v4562_v9 = vunpack.i.l.bf16 %v4561_v5 }
 0x734   : > { %v4154_v14 = vpack.c.bf16 %v4563_v8, %v4562_v9  ;;  %v2696_v8 = vld [vmem:[#allocation35 + $0x20] sm:$0xff]  ;;  %v2697_v9 = vld [vmem:[#allocation35 + $0x28] sm:$0xff] }
 0x735   : > { %v4178_v12 = vpack.c.bf16 %v2697_v9, %v2696_v8 }
 0x736   : > { %4155 = vmatpush3.bf16.msra.mxu1 %v4154_v14 }
 0x737   : > { %4156 = vmatprep.subr.bf16.mxu1 %v5595_v0 }
 0x738   : > { %v4586_v11 = vpop.eup %4585 }
 0x739   : > { %v2120_v23 = vmul.f32 %v4586_v11, %v4582_v58 }
 0x73a   : > { %4158 = vmatpush3.bf16.msra.mxu1 %v4157_v16  ;;  %v2699_v16 = vld [vmem:[#allocation35 + $0x38] sm:$0xff] }
 0x73b   : > { %4159 = vmatprep.subr.bf16.mxu1 %v5595_v0  ;;  %v4181_v18 = vpack.c.bf16 %v2699_v16, %v2698_v17 }
 0x73e   : > { %4161 = vmatpush3.bf16.msra.mxu1 %v4160_v15  ;;  %v2692_v15 = vld [vmem:[#allocation35] sm:$0xff] }
 0x73f   : > { %4162 = vmatprep.subr.bf16.mxu1 %v5595_v0 }
 0x742   : > { %4164 = vmatpush3.bf16.msra.mxu1 %v4163_v21 }
 0x743   : > { %3994 = vmatprep.subr.mxu1 %v5597_v1 }
 0x745   : > { %3992 = vmatmul.mubr.msk.f32.vlgmr.msra.gmra.mrb[12].mxu1 %vm1917_vm4, %v2120_v23  ;;  %v4184_v23 = vpack.c.bf16 %v2693_v19, %v2692_v15 }
 0x746   : > { %3995 = vmatpush3.msra.mxu1 %v2226_v24  ;;  %3996 = vmatprep.mubr.msk.f32.mxu1 %vm5596_vm0, %v5597_v1 }
 0x747   : > { %3999 = vmatprep.subr.mxu1 %v5597_v1 }
 0x797   : > { %v1998_v26 = vpop.f32.mrb[10].mxu1 }
 0x798   : > { %v3955_v27 = vpop.f32.mrb[11].mxu1 }
 0x799   : > { %v2695_v27 = vld [vmem:[#allocation35 + $0x18] sm:$0xff] }
 0x818   : > { %v2222_v29 = vpop.f32.mrb[12].mxu1 }
 0x819   : > { %v3993_v31 = vpop.f32.mrb[13].mxu1  ;;  %3997 = vmatmul.mubr.msk.f32.vlgmr.msra.gmra.mrb[14].mxu1 %vm1818_vm2, %v2222_v29 }
 0x81a   : > { %4000 = vmatpush3.msra.mxu1 %v2002_v28  ;;  %4001 = vmatprep.mubr.msk.f32.mxu1 %vm5596_vm0, %v5597_v1 }
 0x81b   : > { %4171 = vmatprep.subr.bf16.mxu1 %v5595_v0 }
 0x81d   : > { %4002 = vmatmul.mubr.msk.f32.vlgmr.msra.gmra.mrb[16].mxu1 %vm1818_vm2, %v1998_v26  ;;  %v2694_v26 = vld [vmem:[#allocation35 + $0x10] sm:$0xff] }
 0x81e   : > { %4023 = vmatprep.mubr.msk.f32.mxu1 %vm5596_vm0, %v5597_v1  ;;  %4173 = vmatpush3.bf16.msra.mxu1 %v4172_v34  ;;  %v4187_v28 = vpack.c.bf16 %v2695_v27, %v2694_v26 }
 0x81f   : > { %4174 = vmatprep.subr.bf16.mxu1 %v5595_v0 }
 0x822   : > { %4176 = vmatpush3.bf16.msra.mxu1 %v4175_v43 }
 0x823   : > { %4031 = vmatprep.subr.mxu1 %v5597_v1 }
 0x825   : > { %4024 = vmatmul.mubr.msk.f32.vlgmr.msra.gmra.mrb[18].mxu1 %vm1426_vm1, %v2381_v47 }
 0x826   : > { %4033 = vmatprep.mubr.msk.f32.mxu1 %vm5596_vm0, %v5597_v1  ;;  %4032 = vmatpush3.msra.mxu1 %v2616_v22 }
 0x827   : > { %4183 = vmatprep.subr.bf16.mxu1 %v5595_v0 }
 0x8ec   : > { %v2296_v49 = vpop.f32.mrb[14].mxu1 }
 0x8ed   : > { %v3998_v50 = vpop.f32.mrb[15].mxu1 }
 0x8f0   : > { %v2369_v51 = vpop.f32.mrb[16].mxu1 }
 0x8f1   : > { %v2370_v54 = vadd.f32 %v2369_v51, %v2296_v49  ;;  %v4003_v55 = vpop.f32.mrb[17].mxu1 }
 0x8f3   : > { %v6560_v56 = vadd.f32 %v3729_v53, %v2370_v54 }
 0x8f5   : > { %v2391_v58 = vrot.slane %v6560_v56, 4  ;;  %v3000_v49 = vrot.slane %v6560_v56, 2 }
 0x8f7   : > { %4013 = vmatmul.mubr.msk.f32.vlgmr.msra.gmra.mrb[12].mxu0 %vm1426_vm1, %v2391_v58 }
 0x8f8   : > { %4028 = vmatprep.mubr.msk.f32.mxu0 %vm5596_vm0, %v5597_v1  ;;  %v2533_v60 = vpop.f32.mrb[18].mxu1  ;;  %4027 = vmatpush3.msra.mxu0 %v2540_v62 }
 0x8f9   : > { %v4025_v61 = vpop.f32.mrb[19].mxu1  ;;  %4177 = vmatprep.subr.bf16.mxu0 %v5595_v0 }
 0x9ca   : > { %v2460_v2 = vpop.f32.mrb[12].mxu0 }
 0x9cb   : > { %v2534_v4 = vadd.f32 %v2533_v60, %v2460_v2  ;;  %v4014_v5 = vpop.f32.mrb[13].mxu0 }
 0x9cd   : > { %v2538_v10 = vadd.f32 %v2537_v3, %v2534_v4 }
 0x9cf   : > { %v2539_v14 = vmax.f32 %v2538_v10, 0.0 }
 0x9d1   : > { %4029 = vmatmul.mubr.msk.f32.vlgmr.msra.gmra.mrb[14].mxu0 %vm1818_vm2, %v2539_v14 }
 0x9d2   : > { %4179 = vmatpush3.bf16.msra.mxu0 %v4178_v12  ;;  %4044 = vmatprep.mubr.msk.f32.mxu0 %vm5596_vm0, %v5597_v1 }
 0x9d3   : > { %4180 = vmatprep.subr.bf16.mxu0 %v5595_v0 }
 0x9d6   : > { %4182 = vmatpush3.bf16.msra.mxu0 %v4181_v18 }
 0x9d7   : > { %4058 = vmatprep.subr.mxu0 %v5597_v1 }
 0x9d9   : > { %4045 = vmatmul.mubr.msk.f32.vlgmr.msra.gmra.mrb[16].mxu0 %vm1426_vm1, %v2391_v58 }
 0x9da   : > { %4060 = vmatprep.mubr.msk.f32.mxu0 %vm5596_vm0, %v5597_v1  ;;  %4059 = vmatpush3.msra.mxu0 %v2846_v33 }
 0x9db   : > { %4189 = vmatprep.subr.bf16.mxu0 %v5595_v0 }
 0xaa4   : > { %v2611_v20 = vpop.f32.mrb[14].mxu0 }
 0xaa5   : > { %v2612_v11 = vadd.f32 %v2611_v20, %v2541_v13  ;;  %v4030_v21 = vpop.f32.mrb[15].mxu0 }
 0xaa7   : > { %v2615_v24 = vmax.f32 %v2612_v11, 0.0 }
 0xaa9   : > { %4034 = vmatmul.mubr.msk.f32.vlgmr.msra.gmra.mrb[20].mxu1 %vm1818_vm2, %v2615_v24 }
 0xaaa   : > { %4185 = vmatpush3.bf16.msra.mxu1 %v4184_v23  ;;  %4055 = vmatprep.mubr.msk.f32.mxu1 %vm5596_vm0, %v5597_v1 }
 0xaab   : > { %4186 = vmatprep.subr.bf16.mxu1 %v5595_v0 }
 0xaac   : > { %v2766_v29 = vpop.f32.mrb[16].mxu0 }
 0xaad   : > { %v4046_v31 = vpop.f32.mrb[17].mxu0 }
 0xaae   : > { %4188 = vmatpush3.bf16.msra.mxu1 %v4187_v28 }
 0xaaf   : > { %4063 = vmatprep.subr.mxu1 %v5597_v1 }
 0xab1   : > { %4056 = vmatmul.mubr.msk.f32.vlgmr.msra.gmra.mrb[22].mxu1 %vm1426_vm1, %v2691_v32 }
 0xab2   : > { %4065 = vmatprep.mubr.msk.f32.mxu1 %vm5596_vm0, %v5597_v1  ;;  %4064 = vmatpush3.msra.mxu1 %v2922_v30 }
 0xb7c   : > { %v2687_v34 = vpop.f32.mrb[20].mxu1 }
 0xb7d   : > { %v4035_v36 = vpop.f32.mrb[21].mxu1 }
 0xb84   : > { %v2839_v38 = vpop.f32.mrb[22].mxu1 }
 0xb85   : > { %v2840_v40 = vadd.f32 %v2839_v38, %v2766_v29  ;;  %v4057_v42 = vpop.f32.mrb[23].mxu1 }
 0xb87   : > { %v2844_v43 = vadd.f32 %v2843_v39, %v2840_v40 }
 0xb89   : > { %v2845_v44 = vmax.f32 %v2844_v43, 0.0 }
 0xb8b   : > { %4061 = vmatmul.mubr.msk.f32.vlgmr.msra.gmra.mrb[18].mxu0 %vm1818_vm2, %v2845_v44 }
 0xb8c   : > { %4192 = vmatpush3.bf16.xpose.msk.msra.mxu0 %vm4191_vm5, %v4190_v37  ;;  %4084 = vmatprep.mubr.msk.f32.mxu0 %vm5596_vm0, %v5597_v1  ;;  %v2847_v1 = vld [vmem:[#allocation40] sm:$0x1] }
 0xb8d   : > { %4193 = vmatprep.subr.bf16.mxu0 %v5595_v0 }
 0xb94   : > { %4196 = vmatpush3.bf16.xpose.msk.msra.mxu0 %vm4191_vm5, %v4194_v48  ;;  %v3102_v48 = vshrl.u32 %v3101_v46, 7 }
 0xb95   : > { %4197 = vmatprep.subr.bf16.mxu0 %v5595_v0 }
 0xb96   : > { %v3106_v52 = vsub.s32 0, %v3102_v48  ;;  %vm3103_vm7 = vcmp.eq.s32.totalorder %v3102_v48, 4 }
 0xb9c   : > { %4200 = vmatpush3.bf16.xpose.msk.msra.mxu0 %vm4191_vm5, %v4198_v59 }
 0xb9d   : > { %4201 = vmatprep.subr.bf16.mxu0 %v5595_v0  ;;  %v2617_v0 = vld [vmem:[#allocation34] sm:$0x1] }
 0xb9e   : > { %v2688_v6 = vadd.f32 %v2687_v34, %v2617_v0 }
 0xba4   : > { %4204 = vmatpush3.bf16.xpose.msk.msra.mxu0 %vm4191_vm5, %v4202_v7 }
 0xc5e   : > { %v2917_v35 = vpop.f32.mrb[18].mxu0 }
 0xc5f   : > { %v2918_v37 = vadd.f32 %v2917_v35, %v2847_v1  ;;  %v4062_v45 = vpop.f32.mrb[19].mxu0 }
 0xc61   : > { %v2921_v41 = vmax.f32 %v2918_v37, 0.0 }
 0xc63   : > { %4066 = vmatmul.mubr.msk.f32.vlgmr.msra.gmra.mrb[24].mxu1 %vm1818_vm2, %v2921_v41 }
 0xd36   : > { %v2993_v57 = vpop.f32.mrb[24].mxu1 }
 0xd37   : > { %v2994_v59 = vadd.f32 %v2993_v57, %v2923_v25  ;;  %v4067_v63 = vpop.f32.mrb[25].mxu1 }
 0xd39   : > { %v2998_v7 = vrot.slane %v2994_v59, 7  ;;  %v3107_v47 = vrot.slane %v2994_v59, %v3106_v52 }
 0xd3b   : > { %v3003_v50 = vsel %vm3002_vm6, %v2688_v6, %v2998_v7  ;;  %v3108_v51 = vsel %vm3103_vm7, %v3107_v47, %v6560_v56 }
 0xd3c   : > { %v3005_v53 = vsel %vm3004_vm8, %v3003_v50, %v3000_v49  ;;  %3109 = vst.msk [vmem:[%s1359_s15] sm:$0xff] %vm1426_vm1, %v3108_v51 }
 0xd3d   : > { %4085 = vmatmul.mubr.msk.f32.vlgmr.msra.gmra.mrb[20].mxu0 %vm1426_vm1, %v3005_v53 }
 0xd3e   : > { %5370 = shalt.err (!%p5367_p1)
}
 0xd3f   : > { %s5371_s0 = scalar_lea.hbm %s6617_s19, 1024  ;;  %s5375_s22 = scalar_lea.hbm %s6877_s28, 2048 }
 0xd40   : > { %p5372_p12 = scmp.ne.s32.totalorder %s6617_s19, %s5371_s0  ;;  %p5376_p4 = scmp.lt.u32.totalorder %s6617_s19, %s6877_s28 }
 0xd41   : > { %p5377_p10 = scmp.lt.u32.totalorder %s5375_s22, %s5371_s0  ;;  %p5379_p3 = scmp.lt.u32.totalorder %s5371_s0, %s6617_s19 }
 0xd42   : > { %p5373_p2 = pnand %p5372_p12, %p6879_p6 }
 0xd43   : > { %p5378_p11 = por %p5377_p10, %p5376_p4 }
 0xd44   : > { %p5374_p7 = pneg %p5373_p2 }
 0xd45   : > { %p5380_p13 = por %p5379_p3, %p5378_p11 }
 0xd47   : > { %p5381_p5 = pnand %p5380_p13, %p5374_p7 }
 0xd49   : > { %5384 = shalt.err (!%p5381_p5)
}
 0xd4a   : > { %s5600_s8 = smov 128   ;;  %s6880_s6 = sld [smem:[#allocation88_spill]] }
 0xd4b   : > { %s5601_s26 = smov 8   ;;  %s3751_s3 = sshll.u32 %s5780_s18, 7 }
 0xd4c   : > { %4304 = dma.vmem_to_hbm [thread:$0]  (%p6879_p6), %s6620_s1, 1024, %s6617_s19, %s3116_s30, %s5600_s8, %s5600_s8, %s5601_s26  }
 0xd4d   : > { %s3134_s2 = sshll.u32 %s1359_s15, 4  ;;  %s3111_s20 = scalar_lea.sflag [#allocation4], %s6268_s24  ;;  %s3135_s2 = int_to_ptr.vmem [resolvable:$true] %s3134_s2 }
 0xd4e   : > { %s5385_s10 = scalar_lea.vmem %s3135_s2, 128  ;;  %s5602_s27 = smov [#allocation44]  }
 0xd4f   : > { %p5386_p9 = scmp.ne.s32.totalorder %s3135_s2, %s5385_s10  ;;  %s5389_s14 = sshll.u32 %s5602_s27, 4  ;;  %s5390_s14 = int_to_ptr.vmem [resolvable:$false] %s5389_s14 }
 0xd50   : > { %s6646_s23 = scalar_lea.hbm %s6880_s6, %s3751_s3  ;;  %s5391_s4 = scalar_lea.vmem %s5390_s14, 256 }
 0xd51   : > { %p5387_p8 = pnand %p5386_p9, %p6879_p6  ;;  %p5392_p1 = scmp.lt.s32.totalorder %s3135_s2, %s5390_s14 }
 0xd52   : > { %p5393_p12 = scmp.lt.s32.totalorder %s5391_s4, %s5385_s10 }
 0xd53   : > { %p5388_p0 = pneg %p5387_p8 }
 0xd54   : > { %p5394_p2 = por %p5393_p12, %p5392_p1 }
 0xd56   : > { %p5395_p7 = pnand %p5394_p2, %p5388_p0 }
 0xd58   : > { %5398 = shalt.err (!%p5395_p7)
}
 0xd59   : > { %s5399_s16 = scalar_lea.hbm %s6646_s23, 128  ;;  %s5403_s15 = scalar_lea.hbm %s6880_s6, 256 }
 0xd5a   : > { %p5400_p4 = scmp.ne.s32.totalorder %s6646_s23, %s5399_s16  ;;  %p5404_p3 = scmp.lt.u32.totalorder %s6646_s23, %s6880_s6 }
 0xd5b   : > { %p5405_p13 = scmp.lt.u32.totalorder %s5403_s15, %s5399_s16  ;;  %p5407_p9 = scmp.lt.u32.totalorder %s5399_s16, %s6646_s23 }
 0xd5c   : > { %p5401_p10 = pnand %p5400_p4, %p6879_p6 }
 0xd5d   : > { %p5406_p5 = por %p5405_p13, %p5404_p3 }
 0xd5e   : > { %p5402_p11 = pneg %p5401_p10 }
 0xd5f   : > { %p5408_p8 = por %p5407_p9, %p5406_p5 }
 0xd61   : > { %p5409_p0 = pnand %p5408_p8, %p5402_p11 }
 0xd63   : > { %5412 = shalt.err (!%p5409_p0)
}
 0xd64   : > { %4303 = dma.vmem_to_hbm [thread:$0]  (%p6879_p6), %s3135_s2, 128, %s6646_s23, %s3111_s20   ;;  %vm3097_vm10 = vcmask 1042432   ;;  %vm3099_vm11 = vcmask 519168  }
 0xd65   : > { %s6881_s19 = sld [smem:[#allocation90_spill]]  ;;  %s3686_s1 = sshll.u32 %s6268_s24, 2 }
 0xd66   : > { %s3754_s0 = sshll.u32 %s5780_s18, 6  ;;  %s1373_s22 = scalar_lea.vmem [#allocation47], %s3686_s1 }
 0xd67   : > { %s3163_s8 = sshll.u32 %s1373_s22, 4  ;;  %s5603_s18 = smov [#allocation47]   ;;  %s6669_s8 = int_to_ptr.vmem [resolvable:$true] %s3163_s8 }
 0xd68   : > { %s5413_s24 = scalar_lea.vmem %s6669_s8, 64  ;;  %s5417_s3 = sshll.u32 %s5603_s18, 4  ;;  %s5418_s3 = int_to_ptr.vmem [resolvable:$false] %s5417_s3 }
 0xd69   : > { %p5414_p1 = scmp.ne.s32.totalorder %s6669_s8, %s5413_s24  ;;  %s5419_s2 = scalar_lea.vmem %s5418_s3, 128 }
 0xd6a   : > { %p5420_p7 = scmp.lt.s32.totalorder %s6669_s8, %s5418_s3  ;;  %p5421_p4 = scmp.lt.s32.totalorder %s5419_s2, %s5413_s24 }
 0xd6b   : > { %s6667_s26 = scalar_lea.hbm %s6881_s19, %s3754_s0  ;;  %p5415_p12 = pnand %p5414_p1, %p6879_p6 }
 0xd6c   : > { %p5422_p10 = por %p5421_p4, %p5420_p7 }
 0xd6d   : > { %p5416_p2 = pneg %p5415_p12 }
 0xd6f   : > { %p5423_p11 = pnand %p5422_p10, %p5416_p2 }
 0xe10   : > { %v3075_v54 = vpop.f32.mrb[20].mxu0 }
 0xe11   : > { %v3747_v55 = vmul.f32 -1.442695, %v3075_v54  ;;  %v4086_v56 = vpop.f32.mrb[21].mxu0  ;;  %v3087_v62 = vrot.slane %v3075_v54, 1  ;;  %v3089_v2 = vrot.slane %v3075_v54, 2 }
 0xe13   : > { %4587 = vpow2.f32 %v3747_v55 }
 0xe1d   : > { %v4588_v58 = vpop.eup %4587 }
 0xe1e   : > { %v3082_v60 = vadd.f32 1.0, %v4588_v58 }
 0xe20   : > { %4589 = vrcp.f32 %v3082_v60 }
 0xe2a   : > { %v4590_v61 = vpop.eup %4589 }
 0xe2b   : > { %vm3085_vm9 = vcmp.ge.f32.partialorder %v4590_v61, 0.5  ;;  %v3095_v3 = vsel %vm3002_vm6, %v4590_v61, %v3075_v54 }
 0xe2c   : > { %v3091_v4 = vsel %vm3085_vm9, %v3087_v62, %v3089_v2  ;;  %v3096_v8 = vsel %vm3004_vm8, %v3095_v3, %v3075_v54 }
 0xe2d   : > { %v3093_v5 = vrot.slane %v3091_v4, 5 }
 0xe2f   : > { %v3098_v9 = vsel %vm3097_vm10, %v3096_v8, %v3093_v5 }
 0xe30   : > { %3100 = vst.msk [vmem:[%s1373_s22] sm:$0xf] %vm3099_vm11, %v3098_v9 }
 0xe31   : > { %5426 = shalt.err (!%p5423_p11)
}
 0xe32   : > { %s5427_s23 = scalar_lea.hbm %s6667_s26, 64  ;;  %s5431_s20 = scalar_lea.hbm %s6881_s19, 128 }
 0xe33   : > { %p5428_p3 = scmp.ne.s32.totalorder %s6667_s26, %s5427_s23  ;;  %p5432_p9 = scmp.lt.u32.totalorder %s6667_s26, %s6881_s19 }
 0xe34   : > { %p5433_p8 = scmp.lt.u32.totalorder %s5431_s20, %s5427_s23  ;;  %p5435_p1 = scmp.lt.u32.totalorder %s5427_s23, %s6667_s26 }
 0xe35   : > { %p5429_p13 = pnand %p5428_p3, %p6879_p6 }
 0xe36   : > { %p5434_p0 = por %p5433_p8, %p5432_p9 }
 0xe37   : > { %p5430_p5 = pneg %p5429_p13 }
 0xe38   : > { %p5436_p12 = por %p5435_p1, %p5434_p0 }
 0xe3a   : > { %p5437_p2 = pnand %p5436_p12, %p5430_p5 }
 0xe3c   : > { %5440 = shalt.err (!%p5437_p2)
}
 0xe3d   : > { %4305 = dma.vmem_to_hbm [thread:$0]  (%p6879_p6), %s6669_s8, 64, %s6667_s26, %s3116_s30  }
 0xe3e PF: > { %s6882_s10 = sld [smem:[#allocation91_spill]]  ;;  %s6883_s27 = sld [smem:[#allocation96_spill]] }
 0xe3f   : > { %p6885_p4 = scmp.ge.s32.totalorder %s5535_s11, 2 }
 0xe44   : > { %s3175_s14 = sand.u32 1, %s6882_s10   ;;  %p6884_p7 = scmp.ne.s32.totalorder %s6883_s27, 0 }
 0xe45   : > { %s3176_s4 = scalar_lea.sflag [#allocation4], %s3175_s14 }
 0xe46   : > { %p4393_p10 = pnand %p6885_p4, %p6884_p7 }
 0xe48   : > { %5514 = dma.done.wait (!%p4393_p10), %s3176_s4, 128  }
 0xe49   : > { %5516 = vsyncadd (!%p4393_p10), %s3176_s4, 4294967168  ;;  %s6886_s16 = sadd.s32 4294967294, %s5535_s11  }
 0xe4a   : > { %s3184_s15 = sand.u32 1, %s6886_s16  }
 0xe4b   : > { %s3185_s17 = scalar_lea.sflag [#allocation46], %s3184_s15 }
 0xe4c   : > { %5518 = dma.done.wait (!%p4393_p10), %s3185_s17, 1088  }
 0xe4d   : > { %5520 = vsyncadd (!%p4393_p10), %s3185_s17, 4294966208  ;;  %s6887_s11 = sld [smem:[#allocation93_spill]]  ;;  %s6888_s9 = sld [smem:[#allocation92_spill]] }
 0xe4e   : > { %s6889_s10 = sld [smem:[#allocation94_spill]]  ;;  %s6890_s0 = smov %s5527_s7 }
 0xe53   : > { %p93_p6 = scmp.ge.s32.totalorder %s6887_s11, 4   ;;  %s6891_s7 = smov %s6888_s9 }
 0xe55   :  { %95 = sbr.rel (!%p93_p6) target bundleno = 83 (0x53), region = 370 }
 0xe5c   :  { %3199 = vsyncpa [#allocation3], 1 }
 0xe5d   :  { %3201 = vsyncpa [#allocation3 + $0x1], 1 }
 0xe5e   :  { %3202 = vsyncpa [#allocation6], 1 }
 0xe5f   :  { %3204 = vsyncpa [#allocation6 + $0x1], 1 }
 0xe60   :  { %3205 = vsyncpa [#allocation9], 1 }
 0xe61   :  { %3207 = vsyncpa [#allocation9 + $0x1], 1 }
 0xe62   :  { %3208 = vsyncpa [#allocation12], 1 }
 0xe63   :  { %3209 = vsyncpa [#allocation15], 1 }
 0xe64   :  { %3210 = vsyncpa [#allocation18], 1 }
 0xe65   :  { %3211 = vsyncpa [#allocation21], 1 }
 0xe66   :  { %3212 = vsyncpa [#allocation24], 1 }
 0xe67   :  { %3213 = vsyncpa [#allocation27], 1 }
 0xe68   :  { %3214 = vsyncpa [#allocation30], 1 }
 0xe69   :  { %3215 = vsyncpa [#allocation33], 1 }
 0xe6a   :  { %3216 = vsyncpa [#allocation36], 1 }
 0xe6b   :  { %3217 = vsyncpa [#allocation39], 1 }
 0xe6c   :  { %3218 = vsyncpa [#allocation42], 1 }
 0xe6d   :  { %3219 = vsyncpa [#allocation4], 1 }
 0xe6e   :  { %3221 = vsyncpa [#allocation4 + $0x1], 1 }
 0xe6f   :  { %3222 = vsyncpa [#allocation46], 1 }
 0xe70   :  { %3224 = vsyncpa [#allocation46 + $0x1], 1 }

</bundles_post_ra>
